<compile_context>
chip_gen: v5e
topology: v5e:2x2
jax: 0.10.0
libtpu: 0.0.40
codegen_flags: <defaults>
</compile_context>

<pallas_src>
import jax
import jax.numpy as jnp
from jax.experimental import pallas as pl
from jax.experimental.pallas import tpu as pltpu


# --------------------------------------------------------------------------
# Fused kernel factory: all GAT layers + final mean-over-heads, one invocation.
# --------------------------------------------------------------------------
def _make_fused_kernel(layer_meta, negative_slope):
    """layer_meta: tuple of (H, D, has_rw, apply_elu, mean_heads) per layer."""

    def kernel(*refs):
        # refs = (x, adj, <per-layer packed weights...>, out, hbuf_scratch)
        x_ref, adj_ref = refs[0], refs[1]
        out_ref = refs[-2]
        hbuf = refs[-1]                               # [N, max(H*D)] f32 scratch
        w_refs = refs[2:-2]

        adj = adj_ref[...]                            # [N, N]; adj[i, j]=1 iff edge j->i
        in_mask = adj > 0.0
        neg_bias = jnp.where(in_mask, 0.0, jnp.float32(-1e30))

        h = x_ref[...]                                # [N, F0]
        wi = 0
        for (H, D, has_rw, apply_elu, mean_heads) in layer_meta:
            w = w_refs[wi][...]; wi += 1              # [F, H*D]  fc, heads packed on lanes
            al = w_refs[wi][...]; wi += 1             # [H, H*D]  block rows of attn_l
            ar = w_refs[wi][...]; wi += 1             # [H*D, H]  block cols of attn_r
            if has_rw:
                res = jnp.dot(h, w_refs[wi][...],
                              preferred_element_type=jnp.float32)    # Linear residual
                wi += 1
            else:
                res = h                               # DGL Identity residual (f_in == H*D)

            # fc for all heads in one MXU op: z[:, hh*D:(hh+1)*D] is head hh.
            z = jnp.dot(h, w, preferred_element_type=jnp.float32)    # [N, H*D]
            # attention score terms for all heads in two matmuls
            er = jnp.dot(z, ar, preferred_element_type=jnp.float32)  # [N, H]  (dst term)
            el = jax.lax.dot_general(al, z, (((1,), (1,)), ((), ())),
                                     preferred_element_type=jnp.float32)  # [H, N] (src)

            for hh in range(H):
                # e[i, j] = leaky_relu(er_i + el_j); masked softmax over src j
                e = er[:, hh:hh + 1] + el[hh:hh + 1, :]               # [N, N]
                e = jnp.where(e > 0, e, negative_slope * e)
                e = e + neg_bias
                m = jnp.max(e, axis=1, keepdims=True)
                p = jnp.exp(e - m)
                p = jnp.where(in_mask, p, 0.0)
                denom = jnp.maximum(jnp.sum(p, axis=1, keepdims=True),
                                    jnp.float32(1e-30))               # guard empty rows
                alpha = p * pl.reciprocal(denom, approx=True)         # EUP, not VALU div
                # neighbour aggregation for this head, written lane-dense into scratch
                hbuf[:, hh * D:(hh + 1) * D] = jnp.dot(
                    alpha, z[:, hh * D:(hh + 1) * D],
                    preferred_element_type=jnp.float32)

            rst = hbuf[:, :H * D] + res                               # [N, H*D]
            if apply_elu:
                rst = jnp.where(rst > 0, rst, jnp.exp(rst) - 1.0)
            if mean_heads and H > 1:                                  # final .mean(1)
                acc = rst[:, 0:D]
                for hh in range(1, H):
                    acc = acc + rst[:, hh * D:(hh + 1) * D]
                rst = acc * jnp.float32(1.0 / H)
            h = rst

        out_ref[...] = h

    return kernel


# --------------------------------------------------------------------------
# Host-side weight packing (done once; tiny arrays).
# --------------------------------------------------------------------------
def _pack_layer_params(p):
    H, F, D = p["w"].shape
    w = jnp.transpose(p["w"], (1, 0, 2)).reshape(F, H * D)            # [F, H*D]
    eye_h = jnp.eye(H, dtype=jnp.float32)
    al_hd = p["al"][:, 0, :]                                          # [H, D]
    ar_hd = p["ar"][:, 0, :]                                          # [H, D]
    al = (eye_h[:, :, None] * al_hd[None, :, :]).reshape(H, H * D)    # block rows
    ar = (eye_h[:, :, None] * ar_hd[None, :, :]).reshape(H, H * D).T  # block cols
    # init_params emulates DGL's Identity residual exactly when f_in == H*D,
    # so the kernel adds the input directly and skips matmul + weight DMA.
    rw = None if F == H * D else jnp.transpose(p["rw"], (1, 0, 2)).reshape(F, H * D)
    return dict(w=w, al=al, ar=ar, rw=rw, H=H, D=D)


def gatff_forward(x, params, adj, negative_slope=0.2):
    """GATFF.forward: hidden GATConvFF layers (ELU, heads flattened), final
    GATConv, mean over heads. One fused Pallas kernel."""
    N = x.shape[0]
    packed = [_pack_layer_params(p) for p in params]

    flat_inputs = [x, adj]
    meta = []
    hd_max = 0
    for li, pk in enumerate(packed):
        is_last = li == len(packed) - 1
        flat_inputs.extend([pk["w"], pk["al"], pk["ar"]])
        has_rw = pk["rw"] is not None
        if has_rw:
            flat_inputs.append(pk["rw"])
        meta.append((pk["H"], pk["D"], has_rw, not is_last, is_last))
        hd_max = max(hd_max, pk["H"] * pk["D"])

    out_dim = packed[-1]["D"]
    kernel = _make_fused_kernel(tuple(meta), negative_slope)
    return pl.pallas_call(
        kernel,
        out_shape=jax.ShapeDtypeStruct((N, out_dim), jnp.float32),
        scratch_shapes=[pltpu.VMEM((N, hd_max), jnp.float32)],
    )(*flat_inputs)


# ---------------- pure-JAX reference (correctness check only) ----------------
def _gat_layer_ref(x, w, al, ar, adj, rw, negative_slope, apply_elu):
    z = jnp.einsum("nf,hfd->hnd", x, w)
    el = jnp.einsum("hnd,hod->hn", z, al)
    er = jnp.einsum("hnd,hod->hn", z, ar)
    e = er[:, :, None] + el[:, None, :]
    e = jnp.where(e > 0, e, negative_slope * e)
    e = jnp.where(adj[None] > 0, e, -1e30)
    p = jnp.exp(e - e.max(axis=2, keepdims=True))
    p = jnp.where(adj[None] > 0, p, 0.0)
    alpha = p / p.sum(axis=2, keepdims=True)
    rst = jnp.einsum("hij,hjd->hid", alpha, z)
    rst = rst + jnp.einsum("nf,hfd->hnd", x, rw)
    if apply_elu:
        rst = jnp.where(rst > 0, rst, jnp.exp(rst) - 1.0)
    return rst


def gatff_forward_ref(x, params, adj, negative_slope=0.2):
    h = x
    for p in params[:-1]:
        out = _gat_layer_ref(h, p["w"], p["al"], p["ar"], adj, p["rw"],
                             negative_slope, True)
        H, N, D = out.shape
        h = jnp.transpose(out, (1, 0, 2)).reshape(N, H * D)
    p = params[-1]
    out = _gat_layer_ref(h, p["w"], p["al"], p["ar"], adj, p["rw"],
                         negative_slope, False)
    return jnp.mean(out, axis=0)


# ---------------- deterministic parameter init ----------------
def init_params(key, num_layers, in_dim, num_hidden, num_classes, heads):
    params = []
    f_in = in_dim
    layer_dims = [(heads[l], num_hidden) for l in range(num_layers)]
    layer_dims.append((heads[-1], num_classes))
    for (H, D) in layer_dims:
        key, kw, kal, kar, krw = jax.random.split(key, 5)
        w = 0.1 * jax.random.normal(kw, (H, f_in, D), jnp.float32)
        al = 0.1 * jax.random.normal(kal, (H, 1, D), jnp.float32)
        ar = 0.1 * jax.random.normal(kar, (H, 1, D), jnp.float32)
        if f_in == H * D:
            # DGL uses an Identity residual when in_dim == num_heads * out_dim;
            # emulate with an identity-structured per-head projection (the fused
            # kernel detects this and adds the input directly).
            eye = jnp.eye(f_in, dtype=jnp.float32)
            rw = eye.reshape(f_in, H, D).transpose(1, 0, 2)
        else:
            rw = 0.1 * jax.random.normal(krw, (H, f_in, D), jnp.float32)
        params.append(dict(w=w, al=al, ar=ar, rw=rw))
        f_in = H * D
    return params


if __name__ == "__main__":
    key = jax.random.PRNGKey(0)
    # model config consistent with GATFF.__init__
    num_layers = 2
    in_dim = 8
    num_hidden = 8
    num_classes = 4
    heads = [4, 4, 1]
    N = 16  # number of graph nodes

    k_x, k_adj, k_p = jax.random.split(key, 3)
    x = jax.random.normal(k_x, (N, in_dim), jnp.float32)
    rand_edges = (jax.random.uniform(k_adj, (N, N)) < 0.3).astype(jnp.float32)
    adj = jnp.maximum(rand_edges, jnp.eye(N, dtype=jnp.float32))  # + self loops

    params = init_params(k_p, num_layers, in_dim, num_hidden, num_classes, heads)

    logits = gatff_forward(x, params, adj)
    logits = jax.block_until_ready(logits)

    ref = gatff_forward_ref(x, params, adj)
    assert logits.shape == (N, num_classes)
    # slightly relaxed tolerance: softmax uses the EUP approximate reciprocal
    assert jnp.allclose(logits, ref, atol=2e-3, rtol=2e-3)

    print("KERNEL_OK")
</pallas_src>

<mosaic_0001>
module attributes {stable_mosaic.version = 11 : i64} {
  func.func @kernel(%arg0: memref<16x8xf32, #tpu.memory_space<vmem>>, %arg1: memref<16x16xf32, #tpu.memory_space<vmem>>, %arg2: memref<8x32xf32, #tpu.memory_space<vmem>>, %arg3: memref<4x32xf32, #tpu.memory_space<vmem>>, %arg4: memref<32x4xf32, #tpu.memory_space<vmem>>, %arg5: memref<8x32xf32, #tpu.memory_space<vmem>>, %arg6: memref<32x32xf32, #tpu.memory_space<vmem>>, %arg7: memref<4x32xf32, #tpu.memory_space<vmem>>, %arg8: memref<32x4xf32, #tpu.memory_space<vmem>>, %arg9: memref<32x4xf32, #tpu.memory_space<vmem>>, %arg10: memref<1x4xf32, #tpu.memory_space<vmem>>, %arg11: memref<4x1xf32, #tpu.memory_space<vmem>>, %arg12: memref<32x4xf32, #tpu.memory_space<vmem>>, %arg13: memref<16x4xf32, #tpu.memory_space<vmem>>, %arg14: memref<16x32xf32, #tpu.memory_space<vmem>>) attributes {dimension_semantics = [], scalar_prefetch = 0 : i64, scratch_operands = 1 : i64, tpu.core_type = #tpu.core_type<tc>} {
    %c0 = arith.constant 0 : index
    %c0_0 = arith.constant 0 : index
    %0 = vector.load %arg1[%c0, %c0_0] : memref<16x16xf32, #tpu.memory_space<vmem>>, vector<16x16xf32>
    %cst = arith.constant 0.000000e+00 : f32
    %1 = vector.broadcast %cst : f32 to vector<16x16xf32>
    %2 = arith.cmpf ogt, %0, %1 : vector<16x16xf32>
    %cst_1 = arith.constant 0.000000e+00 : f32
    %cst_2 = arith.constant -1.000000e+30 : f32
    %3 = vector.broadcast %cst_1 : f32 to vector<16x16xf32>
    %4 = vector.broadcast %cst_2 : f32 to vector<16x16xf32>
    %5 = arith.select %2, %3, %4 : vector<16x16xi1>, vector<16x16xf32>
    %c0_3 = arith.constant 0 : index
    %c0_4 = arith.constant 0 : index
    %6 = vector.load %arg0[%c0_3, %c0_4] : memref<16x8xf32, #tpu.memory_space<vmem>>, vector<16x8xf32>
    %c0_5 = arith.constant 0 : index
    %c0_6 = arith.constant 0 : index
    %7 = vector.load %arg2[%c0_5, %c0_6] : memref<8x32xf32, #tpu.memory_space<vmem>>, vector<8x32xf32>
    %c0_7 = arith.constant 0 : index
    %c0_8 = arith.constant 0 : index
    %8 = vector.load %arg3[%c0_7, %c0_8] : memref<4x32xf32, #tpu.memory_space<vmem>>, vector<4x32xf32>
    %c0_9 = arith.constant 0 : index
    %c0_10 = arith.constant 0 : index
    %9 = vector.load %arg4[%c0_9, %c0_10] : memref<32x4xf32, #tpu.memory_space<vmem>>, vector<32x4xf32>
    %c0_11 = arith.constant 0 : index
    %c0_12 = arith.constant 0 : index
    %10 = vector.load %arg5[%c0_11, %c0_12] : memref<8x32xf32, #tpu.memory_space<vmem>>, vector<8x32xf32>
    %cst_13 = arith.constant dense<0.000000e+00> : vector<16x32xf32>
    %11 = tpu.matmul %6, %10, %cst_13 {dimension_numbers = #tpu.dot_dimension_numbers<[1], [0], [0], [1], [0, 0, 1, 1], [], []>} : vector<16x8xf32>, vector<8x32xf32>, vector<16x32xf32> -> vector<16x32xf32>
    %cst_14 = arith.constant dense<0.000000e+00> : vector<16x32xf32>
    %12 = tpu.matmul %6, %7, %cst_14 {dimension_numbers = #tpu.dot_dimension_numbers<[1], [0], [0], [1], [0, 0, 1, 1], [], []>} : vector<16x8xf32>, vector<8x32xf32>, vector<16x32xf32> -> vector<16x32xf32>
    %cst_15 = arith.constant dense<0.000000e+00> : vector<16x4xf32>
    %13 = tpu.matmul %12, %9, %cst_15 {dimension_numbers = #tpu.dot_dimension_numbers<[1], [0], [0], [1], [0, 0, 1, 1], [], []>} : vector<16x32xf32>, vector<32x4xf32>, vector<16x4xf32> -> vector<16x4xf32>
    %cst_16 = arith.constant dense<0.000000e+00> : vector<4x16xf32>
    %14 = tpu.matmul %8, %12, %cst_16 {dimension_numbers = #tpu.dot_dimension_numbers<[1], [1], [0], [0], [0, 0, 1, 0], [], []>} : vector<4x32xf32>, vector<16x32xf32>, vector<4x16xf32> -> vector<4x16xf32>
    %15 = vector.extract_strided_slice %13 {offsets = [0, 0], sizes = [16, 1], strides = [1, 1]} : vector<16x4xf32> to vector<16x1xf32>
    %16 = vector.extract_strided_slice %14 {offsets = [0, 0], sizes = [1, 16], strides = [1, 1]} : vector<4x16xf32> to vector<1x16xf32>
    %17 = vector.broadcast %15 : vector<16x1xf32> to vector<16x16xf32>
    %18 = vector.broadcast %16 : vector<1x16xf32> to vector<16x16xf32>
    %19 = arith.addf %17, %18 : vector<16x16xf32>
    %cst_17 = arith.constant 0.000000e+00 : f32
    %20 = vector.broadcast %cst_17 : f32 to vector<16x16xf32>
    %21 = arith.cmpf ogt, %19, %20 : vector<16x16xf32>
    %cst_18 = arith.constant 2.000000e-01 : f32
    %22 = vector.broadcast %cst_18 : f32 to vector<16x16xf32>
    %23 = arith.mulf %22, %19 : vector<16x16xf32>
    %24 = arith.select %21, %19, %23 : vector<16x16xi1>, vector<16x16xf32>
    %25 = arith.addf %24, %5 : vector<16x16xf32>
    %cst_19 = arith.constant dense<0xFF800000> : vector<16xf32>
    %26 = vector.multi_reduction <maximumf>, %25, %cst_19 [1] : vector<16x16xf32> to vector<16xf32>
    %27 = vector.shape_cast %26 : vector<16xf32> to vector<16x1xf32>
    %28 = vector.broadcast %27 : vector<16x1xf32> to vector<16x16xf32>
    %29 = arith.subf %25, %28 : vector<16x16xf32>
    %30 = math.exp %29 : vector<16x16xf32>
    %cst_20 = arith.constant 0.000000e+00 : f32
    %31 = vector.broadcast %cst_20 : f32 to vector<16x16xf32>
    %32 = arith.select %2, %30, %31 : vector<16x16xi1>, vector<16x16xf32>
    %cst_21 = arith.constant dense<0.000000e+00> : vector<16xf32>
    %33 = vector.multi_reduction <add>, %32, %cst_21 [1] : vector<16x16xf32> to vector<16xf32>
    %34 = vector.shape_cast %33 : vector<16xf32> to vector<16x1xf32>
    %cst_22 = arith.constant 1.000000e-30 : f32
    %35 = vector.broadcast %cst_22 : f32 to vector<16x1xf32>
    %36 = arith.maximumf %34, %35 : vector<16x1xf32>
    %37 = tpu.reciprocal %36 {approx = true} : vector<16x1xf32> -> vector<16x1xf32>
    %38 = vector.broadcast %37 : vector<16x1xf32> to vector<16x16xf32>
    %39 = arith.mulf %32, %38 : vector<16x16xf32>
    %40 = vector.extract_strided_slice %12 {offsets = [0, 0], sizes = [16, 8], strides = [1, 1]} : vector<16x32xf32> to vector<16x8xf32>
    %cst_23 = arith.constant dense<0.000000e+00> : vector<16x8xf32>
    %41 = tpu.matmul %39, %40, %cst_23 {dimension_numbers = #tpu.dot_dimension_numbers<[1], [0], [0], [1], [0, 0, 1, 1], [], []>} : vector<16x16xf32>, vector<16x8xf32>, vector<16x8xf32> -> vector<16x8xf32>
    %c0_24 = arith.constant 0 : index
    %c0_25 = arith.constant 0 : index
    %42 = vector.load %arg14[%c0_24, %c0_25] : memref<16x32xf32, #tpu.memory_space<vmem>>, vector<16x8xf32>
    tpu.vector_store %arg14[%c0_24, %c0_25], %41 {strides = array<i32>} : memref<16x32xf32, #tpu.memory_space<vmem>>, vector<16x8xf32>,
    %43 = vector.extract_strided_slice %13 {offsets = [0, 1], sizes = [16, 1], strides = [1, 1]} : vector<16x4xf32> to vector<16x1xf32>
    %44 = vector.extract_strided_slice %14 {offsets = [1, 0], sizes = [1, 16], strides = [1, 1]} : vector<4x16xf32> to vector<1x16xf32>
    %45 = vector.broadcast %43 : vector<16x1xf32> to vector<16x16xf32>
    %46 = vector.broadcast %44 : vector<1x16xf32> to vector<16x16xf32>
    %47 = arith.addf %45, %46 : vector<16x16xf32>
    %cst_26 = arith.constant 0.000000e+00 : f32
    %48 = vector.broadcast %cst_26 : f32 to vector<16x16xf32>
    %49 = arith.cmpf ogt, %47, %48 : vector<16x16xf32>
    %cst_27 = arith.constant 2.000000e-01 : f32
    %50 = vector.broadcast %cst_27 : f32 to vector<16x16xf32>
    %51 = arith.mulf %50, %47 : vector<16x16xf32>
    %52 = arith.select %49, %47, %51 : vector<16x16xi1>, vector<16x16xf32>
    %53 = arith.addf %52, %5 : vector<16x16xf32>
    %cst_28 = arith.constant dense<0xFF800000> : vector<16xf32>
    %54 = vector.multi_reduction <maximumf>, %53, %cst_28 [1] : vector<16x16xf32> to vector<16xf32>
    %55 = vector.shape_cast %54 : vector<16xf32> to vector<16x1xf32>
    %56 = vector.broadcast %55 : vector<16x1xf32> to vector<16x16xf32>
    %57 = arith.subf %53, %56 : vector<16x16xf32>
    %58 = math.exp %57 : vector<16x16xf32>
    %cst_29 = arith.constant 0.000000e+00 : f32
    %59 = vector.broadcast %cst_29 : f32 to vector<16x16xf32>
    %60 = arith.select %2, %58, %59 : vector<16x16xi1>, vector<16x16xf32>
    %cst_30 = arith.constant dense<0.000000e+00> : vector<16xf32>
    %61 = vector.multi_reduction <add>, %60, %cst_30 [1] : vector<16x16xf32> to vector<16xf32>
    %62 = vector.shape_cast %61 : vector<16xf32> to vector<16x1xf32>
    %cst_31 = arith.constant 1.000000e-30 : f32
    %63 = vector.broadcast %cst_31 : f32 to vector<16x1xf32>
    %64 = arith.maximumf %62, %63 : vector<16x1xf32>
    %65 = tpu.reciprocal %64 {approx = true} : vector<16x1xf32> -> vector<16x1xf32>
    %66 = vector.broadcast %65 : vector<16x1xf32> to vector<16x16xf32>
    %67 = arith.mulf %60, %66 : vector<16x16xf32>
    %68 = vector.extract_strided_slice %12 {offsets = [0, 8], sizes = [16, 8], strides = [1, 1]} : vector<16x32xf32> to vector<16x8xf32>
    %cst_32 = arith.constant dense<0.000000e+00> : vector<16x8xf32>
    %69 = tpu.matmul %67, %68, %cst_32 {dimension_numbers = #tpu.dot_dimension_numbers<[1], [0], [0], [1], [0, 0, 1, 1], [], []>} : vector<16x16xf32>, vector<16x8xf32>, vector<16x8xf32> -> vector<16x8xf32>
    %c0_33 = arith.constant 0 : index
    %c8 = arith.constant 8 : index
    %70 = vector.load %arg14[%c0_33, %c8] : memref<16x32xf32, #tpu.memory_space<vmem>>, vector<16x8xf32>
    tpu.vector_store %arg14[%c0_33, %c8], %69 {strides = array<i32>} : memref<16x32xf32, #tpu.memory_space<vmem>>, vector<16x8xf32>,
    %71 = vector.extract_strided_slice %13 {offsets = [0, 2], sizes = [16, 1], strides = [1, 1]} : vector<16x4xf32> to vector<16x1xf32>
    %72 = vector.extract_strided_slice %14 {offsets = [2, 0], sizes = [1, 16], strides = [1, 1]} : vector<4x16xf32> to vector<1x16xf32>
    %73 = vector.broadcast %71 : vector<16x1xf32> to vector<16x16xf32>
    %74 = vector.broadcast %72 : vector<1x16xf32> to vector<16x16xf32>
    %75 = arith.addf %73, %74 : vector<16x16xf32>
    %cst_34 = arith.constant 0.000000e+00 : f32
    %76 = vector.broadcast %cst_34 : f32 to vector<16x16xf32>
    %77 = arith.cmpf ogt, %75, %76 : vector<16x16xf32>
    %cst_35 = arith.constant 2.000000e-01 : f32
    %78 = vector.broadcast %cst_35 : f32 to vector<16x16xf32>
    %79 = arith.mulf %78, %75 : vector<16x16xf32>
    %80 = arith.select %77, %75, %79 : vector<16x16xi1>, vector<16x16xf32>
    %81 = arith.addf %80, %5 : vector<16x16xf32>
    %cst_36 = arith.constant dense<0xFF800000> : vector<16xf32>
    %82 = vector.multi_reduction <maximumf>, %81, %cst_36 [1] : vector<16x16xf32> to vector<16xf32>
    %83 = vector.shape_cast %82 : vector<16xf32> to vector<16x1xf32>
    %84 = vector.broadcast %83 : vector<16x1xf32> to vector<16x16xf32>
    %85 = arith.subf %81, %84 : vector<16x16xf32>
    %86 = math.exp %85 : vector<16x16xf32>
    %cst_37 = arith.constant 0.000000e+00 : f32
    %87 = vector.broadcast %cst_37 : f32 to vector<16x16xf32>
    %88 = arith.select %2, %86, %87 : vector<16x16xi1>, vector<16x16xf32>
    %cst_38 = arith.constant dense<0.000000e+00> : vector<16xf32>
    %89 = vector.multi_reduction <add>, %88, %cst_38 [1] : vector<16x16xf32> to vector<16xf32>
    %90 = vector.shape_cast %89 : vector<16xf32> to vector<16x1xf32>
    %cst_39 = arith.constant 1.000000e-30 : f32
    %91 = vector.broadcast %cst_39 : f32 to vector<16x1xf32>
    %92 = arith.maximumf %90, %91 : vector<16x1xf32>
    %93 = tpu.reciprocal %92 {approx = true} : vector<16x1xf32> -> vector<16x1xf32>
    %94 = vector.broadcast %93 : vector<16x1xf32> to vector<16x16xf32>
    %95 = arith.mulf %88, %94 : vector<16x16xf32>
    %96 = vector.extract_strided_slice %12 {offsets = [0, 16], sizes = [16, 8], strides = [1, 1]} : vector<16x32xf32> to vector<16x8xf32>
    %cst_40 = arith.constant dense<0.000000e+00> : vector<16x8xf32>
    %97 = tpu.matmul %95, %96, %cst_40 {dimension_numbers = #tpu.dot_dimension_numbers<[1], [0], [0], [1], [0, 0, 1, 1], [], []>} : vector<16x16xf32>, vector<16x8xf32>, vector<16x8xf32> -> vector<16x8xf32>
    %c0_41 = arith.constant 0 : index
    %c16 = arith.constant 16 : index
    %98 = vector.load %arg14[%c0_41, %c16] : memref<16x32xf32, #tpu.memory_space<vmem>>, vector<16x8xf32>
    tpu.vector_store %arg14[%c0_41, %c16], %97 {strides = array<i32>} : memref<16x32xf32, #tpu.memory_space<vmem>>, vector<16x8xf32>,
    %99 = vector.extract_strided_slice %13 {offsets = [0, 3], sizes = [16, 1], strides = [1, 1]} : vector<16x4xf32> to vector<16x1xf32>
    %100 = vector.extract_strided_slice %14 {offsets = [3, 0], sizes = [1, 16], strides = [1, 1]} : vector<4x16xf32> to vector<1x16xf32>
    %101 = vector.broadcast %99 : vector<16x1xf32> to vector<16x16xf32>
    %102 = vector.broadcast %100 : vector<1x16xf32> to vector<16x16xf32>
    %103 = arith.addf %101, %102 : vector<16x16xf32>
    %cst_42 = arith.constant 0.000000e+00 : f32
    %104 = vector.broadcast %cst_42 : f32 to vector<16x16xf32>
    %105 = arith.cmpf ogt, %103, %104 : vector<16x16xf32>
    %cst_43 = arith.constant 2.000000e-01 : f32
    %106 = vector.broadcast %cst_43 : f32 to vector<16x16xf32>
    %107 = arith.mulf %106, %103 : vector<16x16xf32>
    %108 = arith.select %105, %103, %107 : vector<16x16xi1>, vector<16x16xf32>
    %109 = arith.addf %108, %5 : vector<16x16xf32>
    %cst_44 = arith.constant dense<0xFF800000> : vector<16xf32>
    %110 = vector.multi_reduction <maximumf>, %109, %cst_44 [1] : vector<16x16xf32> to vector<16xf32>
    %111 = vector.shape_cast %110 : vector<16xf32> to vector<16x1xf32>
    %112 = vector.broadcast %111 : vector<16x1xf32> to vector<16x16xf32>
    %113 = arith.subf %109, %112 : vector<16x16xf32>
    %114 = math.exp %113 : vector<16x16xf32>
    %cst_45 = arith.constant 0.000000e+00 : f32
    %115 = vector.broadcast %cst_45 : f32 to vector<16x16xf32>
    %116 = arith.select %2, %114, %115 : vector<16x16xi1>, vector<16x16xf32>
    %cst_46 = arith.constant dense<0.000000e+00> : vector<16xf32>
    %117 = vector.multi_reduction <add>, %116, %cst_46 [1] : vector<16x16xf32> to vector<16xf32>
    %118 = vector.shape_cast %117 : vector<16xf32> to vector<16x1xf32>
    %cst_47 = arith.constant 1.000000e-30 : f32
    %119 = vector.broadcast %cst_47 : f32 to vector<16x1xf32>
    %120 = arith.maximumf %118, %119 : vector<16x1xf32>
    %121 = tpu.reciprocal %120 {approx = true} : vector<16x1xf32> -> vector<16x1xf32>
    %122 = vector.broadcast %121 : vector<16x1xf32> to vector<16x16xf32>
    %123 = arith.mulf %116, %122 : vector<16x16xf32>
    %124 = vector.extract_strided_slice %12 {offsets = [0, 24], sizes = [16, 8], strides = [1, 1]} : vector<16x32xf32> to vector<16x8xf32>
    %cst_48 = arith.constant dense<0.000000e+00> : vector<16x8xf32>
    %125 = tpu.matmul %123, %124, %cst_48 {dimension_numbers = #tpu.dot_dimension_numbers<[1], [0], [0], [1], [0, 0, 1, 1], [], []>} : vector<16x16xf32>, vector<16x8xf32>, vector<16x8xf32> -> vector<16x8xf32>
    %c0_49 = arith.constant 0 : index
    %c24 = arith.constant 24 : index
    %126 = vector.load %arg14[%c0_49, %c24] : memref<16x32xf32, #tpu.memory_space<vmem>>, vector<16x8xf32>
    tpu.vector_store %arg14[%c0_49, %c24], %125 {strides = array<i32>} : memref<16x32xf32, #tpu.memory_space<vmem>>, vector<16x8xf32>,
    %c0_50 = arith.constant 0 : index
    %c0_51 = arith.constant 0 : index
    %127 = vector.load %arg14[%c0_50, %c0_51] : memref<16x32xf32, #tpu.memory_space<vmem>>, vector<16x32xf32>
    %128 = arith.addf %127, %11 : vector<16x32xf32>
    %cst_52 = arith.constant 0.000000e+00 : f32
    %129 = vector.broadcast %cst_52 : f32 to vector<16x32xf32>
    %130 = arith.cmpf ogt, %128, %129 : vector<16x32xf32>
    %131 = math.exp %128 : vector<16x32xf32>
    %cst_53 = arith.constant 1.000000e+00 : f32
    %132 = vector.broadcast %cst_53 : f32 to vector<16x32xf32>
    %133 = arith.subf %131, %132 : vector<16x32xf32>
    %134 = arith.select %130, %128, %133 : vector<16x32xi1>, vector<16x32xf32>
    %c0_54 = arith.constant 0 : index
    %c0_55 = arith.constant 0 : index
    %135 = vector.load %arg6[%c0_54, %c0_55] : memref<32x32xf32, #tpu.memory_space<vmem>>, vector<32x32xf32>
    %c0_56 = arith.constant 0 : index
    %c0_57 = arith.constant 0 : index
    %136 = vector.load %arg7[%c0_56, %c0_57] : memref<4x32xf32, #tpu.memory_space<vmem>>, vector<4x32xf32>
    %c0_58 = arith.constant 0 : index
    %c0_59 = arith.constant 0 : index
    %137 = vector.load %arg8[%c0_58, %c0_59] : memref<32x4xf32, #tpu.memory_space<vmem>>, vector<32x4xf32>
    %cst_60 = arith.constant dense<0.000000e+00> : vector<16x32xf32>
    %138 = tpu.matmul %134, %135, %cst_60 {dimension_numbers = #tpu.dot_dimension_numbers<[1], [0], [0], [1], [0, 0, 1, 1], [], []>} : vector<16x32xf32>, vector<32x32xf32>, vector<16x32xf32> -> vector<16x32xf32>
    %cst_61 = arith.constant dense<0.000000e+00> : vector<16x4xf32>
    %139 = tpu.matmul %138, %137, %cst_61 {dimension_numbers = #tpu.dot_dimension_numbers<[1], [0], [0], [1], [0, 0, 1, 1], [], []>} : vector<16x32xf32>, vector<32x4xf32>, vector<16x4xf32> -> vector<16x4xf32>
    %cst_62 = arith.constant dense<0.000000e+00> : vector<4x16xf32>
    %140 = tpu.matmul %136, %138, %cst_62 {dimension_numbers = #tpu.dot_dimension_numbers<[1], [1], [0], [0], [0, 0, 1, 0], [], []>} : vector<4x32xf32>, vector<16x32xf32>, vector<4x16xf32> -> vector<4x16xf32>
    %141 = vector.extract_strided_slice %139 {offsets = [0, 0], sizes = [16, 1], strides = [1, 1]} : vector<16x4xf32> to vector<16x1xf32>
    %142 = vector.extract_strided_slice %140 {offsets = [0, 0], sizes = [1, 16], strides = [1, 1]} : vector<4x16xf32> to vector<1x16xf32>
    %143 = vector.broadcast %141 : vector<16x1xf32> to vector<16x16xf32>
    %144 = vector.broadcast %142 : vector<1x16xf32> to vector<16x16xf32>
    %145 = arith.addf %143, %144 : vector<16x16xf32>
    %cst_63 = arith.constant 0.000000e+00 : f32
    %146 = vector.broadcast %cst_63 : f32 to vector<16x16xf32>
    %147 = arith.cmpf ogt, %145, %146 : vector<16x16xf32>
    %cst_64 = arith.constant 2.000000e-01 : f32
    %148 = vector.broadcast %cst_64 : f32 to vector<16x16xf32>
    %149 = arith.mulf %148, %145 : vector<16x16xf32>
    %150 = arith.select %147, %145, %149 : vector<16x16xi1>, vector<16x16xf32>
    %151 = arith.addf %150, %5 : vector<16x16xf32>
    %cst_65 = arith.constant dense<0xFF800000> : vector<16xf32>
    %152 = vector.multi_reduction <maximumf>, %151, %cst_65 [1] : vector<16x16xf32> to vector<16xf32>
    %153 = vector.shape_cast %152 : vector<16xf32> to vector<16x1xf32>
    %154 = vector.broadcast %153 : vector<16x1xf32> to vector<16x16xf32>
    %155 = arith.subf %151, %154 : vector<16x16xf32>
    %156 = math.exp %155 : vector<16x16xf32>
    %cst_66 = arith.constant 0.000000e+00 : f32
    %157 = vector.broadcast %cst_66 : f32 to vector<16x16xf32>
    %158 = arith.select %2, %156, %157 : vector<16x16xi1>, vector<16x16xf32>
    %cst_67 = arith.constant dense<0.000000e+00> : vector<16xf32>
    %159 = vector.multi_reduction <add>, %158, %cst_67 [1] : vector<16x16xf32> to vector<16xf32>
    %160 = vector.shape_cast %159 : vector<16xf32> to vector<16x1xf32>
    %cst_68 = arith.constant 1.000000e-30 : f32
    %161 = vector.broadcast %cst_68 : f32 to vector<16x1xf32>
    %162 = arith.maximumf %160, %161 : vector<16x1xf32>
    %163 = tpu.reciprocal %162 {approx = true} : vector<16x1xf32> -> vector<16x1xf32>
    %164 = vector.broadcast %163 : vector<16x1xf32> to vector<16x16xf32>
    %165 = arith.mulf %158, %164 : vector<16x16xf32>
    %166 = vector.extract_strided_slice %138 {offsets = [0, 0], sizes = [16, 8], strides = [1, 1]} : vector<16x32xf32> to vector<16x8xf32>
    %cst_69 = arith.constant dense<0.000000e+00> : vector<16x8xf32>
    %167 = tpu.matmul %165, %166, %cst_69 {dimension_numbers = #tpu.dot_dimension_numbers<[1], [0], [0], [1], [0, 0, 1, 1], [], []>} : vector<16x16xf32>, vector<16x8xf32>, vector<16x8xf32> -> vector<16x8xf32>
    %c0_70 = arith.constant 0 : index
    %c0_71 = arith.constant 0 : index
    %168 = vector.load %arg14[%c0_70, %c0_71] : memref<16x32xf32, #tpu.memory_space<vmem>>, vector<16x8xf32>
    tpu.vector_store %arg14[%c0_70, %c0_71], %167 {strides = array<i32>} : memref<16x32xf32, #tpu.memory_space<vmem>>, vector<16x8xf32>,
    %169 = vector.extract_strided_slice %139 {offsets = [0, 1], sizes = [16, 1], strides = [1, 1]} : vector<16x4xf32> to vector<16x1xf32>
    %170 = vector.extract_strided_slice %140 {offsets = [1, 0], sizes = [1, 16], strides = [1, 1]} : vector<4x16xf32> to vector<1x16xf32>
    %171 = vector.broadcast %169 : vector<16x1xf32> to vector<16x16xf32>
    %172 = vector.broadcast %170 : vector<1x16xf32> to vector<16x16xf32>
    %173 = arith.addf %171, %172 : vector<16x16xf32>
    %cst_72 = arith.constant 0.000000e+00 : f32
    %174 = vector.broadcast %cst_72 : f32 to vector<16x16xf32>
    %175 = arith.cmpf ogt, %173, %174 : vector<16x16xf32>
    %cst_73 = arith.constant 2.000000e-01 : f32
    %176 = vector.broadcast %cst_73 : f32 to vector<16x16xf32>
    %177 = arith.mulf %176, %173 : vector<16x16xf32>
    %178 = arith.select %175, %173, %177 : vector<16x16xi1>, vector<16x16xf32>
    %179 = arith.addf %178, %5 : vector<16x16xf32>
    %cst_74 = arith.constant dense<0xFF800000> : vector<16xf32>
    %180 = vector.multi_reduction <maximumf>, %179, %cst_74 [1] : vector<16x16xf32> to vector<16xf32>
    %181 = vector.shape_cast %180 : vector<16xf32> to vector<16x1xf32>
    %182 = vector.broadcast %181 : vector<16x1xf32> to vector<16x16xf32>
    %183 = arith.subf %179, %182 : vector<16x16xf32>
    %184 = math.exp %183 : vector<16x16xf32>
    %cst_75 = arith.constant 0.000000e+00 : f32
    %185 = vector.broadcast %cst_75 : f32 to vector<16x16xf32>
    %186 = arith.select %2, %184, %185 : vector<16x16xi1>, vector<16x16xf32>
    %cst_76 = arith.constant dense<0.000000e+00> : vector<16xf32>
    %187 = vector.multi_reduction <add>, %186, %cst_76 [1] : vector<16x16xf32> to vector<16xf32>
    %188 = vector.shape_cast %187 : vector<16xf32> to vector<16x1xf32>
    %cst_77 = arith.constant 1.000000e-30 : f32
    %189 = vector.broadcast %cst_77 : f32 to vector<16x1xf32>
    %190 = arith.maximumf %188, %189 : vector<16x1xf32>
    %191 = tpu.reciprocal %190 {approx = true} : vector<16x1xf32> -> vector<16x1xf32>
    %192 = vector.broadcast %191 : vector<16x1xf32> to vector<16x16xf32>
    %193 = arith.mulf %186, %192 : vector<16x16xf32>
    %194 = vector.extract_strided_slice %138 {offsets = [0, 8], sizes = [16, 8], strides = [1, 1]} : vector<16x32xf32> to vector<16x8xf32>
    %cst_78 = arith.constant dense<0.000000e+00> : vector<16x8xf32>
    %195 = tpu.matmul %193, %194, %cst_78 {dimension_numbers = #tpu.dot_dimension_numbers<[1], [0], [0], [1], [0, 0, 1, 1], [], []>} : vector<16x16xf32>, vector<16x8xf32>, vector<16x8xf32> -> vector<16x8xf32>
    %c0_79 = arith.constant 0 : index
    %c8_80 = arith.constant 8 : index
    %196 = vector.load %arg14[%c0_79, %c8_80] : memref<16x32xf32, #tpu.memory_space<vmem>>, vector<16x8xf32>
    tpu.vector_store %arg14[%c0_79, %c8_80], %195 {strides = array<i32>} : memref<16x32xf32, #tpu.memory_space<vmem>>, vector<16x8xf32>,
    %197 = vector.extract_strided_slice %139 {offsets = [0, 2], sizes = [16, 1], strides = [1, 1]} : vector<16x4xf32> to vector<16x1xf32>
    %198 = vector.extract_strided_slice %140 {offsets = [2, 0], sizes = [1, 16], strides = [1, 1]} : vector<4x16xf32> to vector<1x16xf32>
    %199 = vector.broadcast %197 : vector<16x1xf32> to vector<16x16xf32>
    %200 = vector.broadcast %198 : vector<1x16xf32> to vector<16x16xf32>
    %201 = arith.addf %199, %200 : vector<16x16xf32>
    %cst_81 = arith.constant 0.000000e+00 : f32
    %202 = vector.broadcast %cst_81 : f32 to vector<16x16xf32>
    %203 = arith.cmpf ogt, %201, %202 : vector<16x16xf32>
    %cst_82 = arith.constant 2.000000e-01 : f32
    %204 = vector.broadcast %cst_82 : f32 to vector<16x16xf32>
    %205 = arith.mulf %204, %201 : vector<16x16xf32>
    %206 = arith.select %203, %201, %205 : vector<16x16xi1>, vector<16x16xf32>
    %207 = arith.addf %206, %5 : vector<16x16xf32>
    %cst_83 = arith.constant dense<0xFF800000> : vector<16xf32>
    %208 = vector.multi_reduction <maximumf>, %207, %cst_83 [1] : vector<16x16xf32> to vector<16xf32>
    %209 = vector.shape_cast %208 : vector<16xf32> to vector<16x1xf32>
    %210 = vector.broadcast %209 : vector<16x1xf32> to vector<16x16xf32>
    %211 = arith.subf %207, %210 : vector<16x16xf32>
    %212 = math.exp %211 : vector<16x16xf32>
    %cst_84 = arith.constant 0.000000e+00 : f32
    %213 = vector.broadcast %cst_84 : f32 to vector<16x16xf32>
    %214 = arith.select %2, %212, %213 : vector<16x16xi1>, vector<16x16xf32>
    %cst_85 = arith.constant dense<0.000000e+00> : vector<16xf32>
    %215 = vector.multi_reduction <add>, %214, %cst_85 [1] : vector<16x16xf32> to vector<16xf32>
    %216 = vector.shape_cast %215 : vector<16xf32> to vector<16x1xf32>
    %cst_86 = arith.constant 1.000000e-30 : f32
    %217 = vector.broadcast %cst_86 : f32 to vector<16x1xf32>
    %218 = arith.maximumf %216, %217 : vector<16x1xf32>
    %219 = tpu.reciprocal %218 {approx = true} : vector<16x1xf32> -> vector<16x1xf32>
    %220 = vector.broadcast %219 : vector<16x1xf32> to vector<16x16xf32>
    %221 = arith.mulf %214, %220 : vector<16x16xf32>
    %222 = vector.extract_strided_slice %138 {offsets = [0, 16], sizes = [16, 8], strides = [1, 1]} : vector<16x32xf32> to vector<16x8xf32>
    %cst_87 = arith.constant dense<0.000000e+00> : vector<16x8xf32>
    %223 = tpu.matmul %221, %222, %cst_87 {dimension_numbers = #tpu.dot_dimension_numbers<[1], [0], [0], [1], [0, 0, 1, 1], [], []>} : vector<16x16xf32>, vector<16x8xf32>, vector<16x8xf32> -> vector<16x8xf32>
    %c0_88 = arith.constant 0 : index
    %c16_89 = arith.constant 16 : index
    %224 = vector.load %arg14[%c0_88, %c16_89] : memref<16x32xf32, #tpu.memory_space<vmem>>, vector<16x8xf32>
    tpu.vector_store %arg14[%c0_88, %c16_89], %223 {strides = array<i32>} : memref<16x32xf32, #tpu.memory_space<vmem>>, vector<16x8xf32>,
    %225 = vector.extract_strided_slice %139 {offsets = [0, 3], sizes = [16, 1], strides = [1, 1]} : vector<16x4xf32> to vector<16x1xf32>
    %226 = vector.extract_strided_slice %140 {offsets = [3, 0], sizes = [1, 16], strides = [1, 1]} : vector<4x16xf32> to vector<1x16xf32>
    %227 = vector.broadcast %225 : vector<16x1xf32> to vector<16x16xf32>
    %228 = vector.broadcast %226 : vector<1x16xf32> to vector<16x16xf32>
    %229 = arith.addf %227, %228 : vector<16x16xf32>
    %cst_90 = arith.constant 0.000000e+00 : f32
    %230 = vector.broadcast %cst_90 : f32 to vector<16x16xf32>
    %231 = arith.cmpf ogt, %229, %230 : vector<16x16xf32>
    %cst_91 = arith.constant 2.000000e-01 : f32
    %232 = vector.broadcast %cst_91 : f32 to vector<16x16xf32>
    %233 = arith.mulf %232, %229 : vector<16x16xf32>
    %234 = arith.select %231, %229, %233 : vector<16x16xi1>, vector<16x16xf32>
    %235 = arith.addf %234, %5 : vector<16x16xf32>
    %cst_92 = arith.constant dense<0xFF800000> : vector<16xf32>
    %236 = vector.multi_reduction <maximumf>, %235, %cst_92 [1] : vector<16x16xf32> to vector<16xf32>
    %237 = vector.shape_cast %236 : vector<16xf32> to vector<16x1xf32>
    %238 = vector.broadcast %237 : vector<16x1xf32> to vector<16x16xf32>
    %239 = arith.subf %235, %238 : vector<16x16xf32>
    %240 = math.exp %239 : vector<16x16xf32>
    %cst_93 = arith.constant 0.000000e+00 : f32
    %241 = vector.broadcast %cst_93 : f32 to vector<16x16xf32>
    %242 = arith.select %2, %240, %241 : vector<16x16xi1>, vector<16x16xf32>
    %cst_94 = arith.constant dense<0.000000e+00> : vector<16xf32>
    %243 = vector.multi_reduction <add>, %242, %cst_94 [1] : vector<16x16xf32> to vector<16xf32>
    %244 = vector.shape_cast %243 : vector<16xf32> to vector<16x1xf32>
    %cst_95 = arith.constant 1.000000e-30 : f32
    %245 = vector.broadcast %cst_95 : f32 to vector<16x1xf32>
    %246 = arith.maximumf %244, %245 : vector<16x1xf32>
    %247 = tpu.reciprocal %246 {approx = true} : vector<16x1xf32> -> vector<16x1xf32>
    %248 = vector.broadcast %247 : vector<16x1xf32> to vector<16x16xf32>
    %249 = arith.mulf %242, %248 : vector<16x16xf32>
    %250 = vector.extract_strided_slice %138 {offsets = [0, 24], sizes = [16, 8], strides = [1, 1]} : vector<16x32xf32> to vector<16x8xf32>
    %cst_96 = arith.constant dense<0.000000e+00> : vector<16x8xf32>
    %251 = tpu.matmul %249, %250, %cst_96 {dimension_numbers = #tpu.dot_dimension_numbers<[1], [0], [0], [1], [0, 0, 1, 1], [], []>} : vector<16x16xf32>, vector<16x8xf32>, vector<16x8xf32> -> vector<16x8xf32>
    %c0_97 = arith.constant 0 : index
    %c24_98 = arith.constant 24 : index
    %252 = vector.load %arg14[%c0_97, %c24_98] : memref<16x32xf32, #tpu.memory_space<vmem>>, vector<16x8xf32>
    tpu.vector_store %arg14[%c0_97, %c24_98], %251 {strides = array<i32>} : memref<16x32xf32, #tpu.memory_space<vmem>>, vector<16x8xf32>,
    %c0_99 = arith.constant 0 : index
    %c0_100 = arith.constant 0 : index
    %253 = vector.load %arg14[%c0_99, %c0_100] : memref<16x32xf32, #tpu.memory_space<vmem>>, vector<16x32xf32>
    %254 = arith.addf %253, %134 : vector<16x32xf32>
    %cst_101 = arith.constant 0.000000e+00 : f32
    %255 = vector.broadcast %cst_101 : f32 to vector<16x32xf32>
    %256 = arith.cmpf ogt, %254, %255 : vector<16x32xf32>
    %257 = math.exp %254 : vector<16x32xf32>
    %cst_102 = arith.constant 1.000000e+00 : f32
    %258 = vector.broadcast %cst_102 : f32 to vector<16x32xf32>
    %259 = arith.subf %257, %258 : vector<16x32xf32>
    %260 = arith.select %256, %254, %259 : vector<16x32xi1>, vector<16x32xf32>
    %c0_103 = arith.constant 0 : index
    %c0_104 = arith.constant 0 : index
    %261 = vector.load %arg9[%c0_103, %c0_104] : memref<32x4xf32, #tpu.memory_space<vmem>>, vector<32x4xf32>
    %c0_105 = arith.constant 0 : index
    %c0_106 = arith.constant 0 : index
    %262 = vector.load %arg10[%c0_105, %c0_106] : memref<1x4xf32, #tpu.memory_space<vmem>>, vector<1x4xf32>
    %c0_107 = arith.constant 0 : index
    %c0_108 = arith.constant 0 : index
    %263 = vector.load %arg11[%c0_107, %c0_108] : memref<4x1xf32, #tpu.memory_space<vmem>>, vector<4x1xf32>
    %c0_109 = arith.constant 0 : index
    %c0_110 = arith.constant 0 : index
    %264 = vector.load %arg12[%c0_109, %c0_110] : memref<32x4xf32, #tpu.memory_space<vmem>>, vector<32x4xf32>
    %cst_111 = arith.constant dense<0.000000e+00> : vector<16x4xf32>
    %265 = tpu.matmul %260, %264, %cst_111 {dimension_numbers = #tpu.dot_dimension_numbers<[1], [0], [0], [1], [0, 0, 1, 1], [], []>} : vector<16x32xf32>, vector<32x4xf32>, vector<16x4xf32> -> vector<16x4xf32>
    %cst_112 = arith.constant dense<0.000000e+00> : vector<16x4xf32>
    %266 = tpu.matmul %260, %261, %cst_112 {dimension_numbers = #tpu.dot_dimension_numbers<[1], [0], [0], [1], [0, 0, 1, 1], [], []>} : vector<16x32xf32>, vector<32x4xf32>, vector<16x4xf32> -> vector<16x4xf32>
    %cst_113 = arith.constant dense<0.000000e+00> : vector<16x1xf32>
    %267 = tpu.matmul %266, %263, %cst_113 {dimension_numbers = #tpu.dot_dimension_numbers<[1], [0], [0], [1], [0, 0, 1, 1], [], []>} : vector<16x4xf32>, vector<4x1xf32>, vector<16x1xf32> -> vector<16x1xf32>
    %cst_114 = arith.constant dense<0.000000e+00> : vector<1x16xf32>
    %268 = tpu.matmul %262, %266, %cst_114 {dimension_numbers = #tpu.dot_dimension_numbers<[1], [1], [0], [0], [0, 0, 1, 0], [], []>} : vector<1x4xf32>, vector<16x4xf32>, vector<1x16xf32> -> vector<1x16xf32>
    %269 = vector.broadcast %267 : vector<16x1xf32> to vector<16x16xf32>
    %270 = vector.broadcast %268 : vector<1x16xf32> to vector<16x16xf32>
    %271 = arith.addf %269, %270 : vector<16x16xf32>
    %cst_115 = arith.constant 0.000000e+00 : f32
    %272 = vector.broadcast %cst_115 : f32 to vector<16x16xf32>
    %273 = arith.cmpf ogt, %271, %272 : vector<16x16xf32>
    %cst_116 = arith.constant 2.000000e-01 : f32
    %274 = vector.broadcast %cst_116 : f32 to vector<16x16xf32>
    %275 = arith.mulf %274, %271 : vector<16x16xf32>
    %276 = arith.select %273, %271, %275 : vector<16x16xi1>, vector<16x16xf32>
    %277 = arith.addf %276, %5 : vector<16x16xf32>
    %cst_117 = arith.constant dense<0xFF800000> : vector<16xf32>
    %278 = vector.multi_reduction <maximumf>, %277, %cst_117 [1] : vector<16x16xf32> to vector<16xf32>
    %279 = vector.shape_cast %278 : vector<16xf32> to vector<16x1xf32>
    %280 = vector.broadcast %279 : vector<16x1xf32> to vector<16x16xf32>
    %281 = arith.subf %277, %280 : vector<16x16xf32>
    %282 = math.exp %281 : vector<16x16xf32>
    %cst_118 = arith.constant 0.000000e+00 : f32
    %283 = vector.broadcast %cst_118 : f32 to vector<16x16xf32>
    %284 = arith.select %2, %282, %283 : vector<16x16xi1>, vector<16x16xf32>
    %cst_119 = arith.constant dense<0.000000e+00> : vector<16xf32>
    %285 = vector.multi_reduction <add>, %284, %cst_119 [1] : vector<16x16xf32> to vector<16xf32>
    %286 = vector.shape_cast %285 : vector<16xf32> to vector<16x1xf32>
    %cst_120 = arith.constant 1.000000e-30 : f32
    %287 = vector.broadcast %cst_120 : f32 to vector<16x1xf32>
    %288 = arith.maximumf %286, %287 : vector<16x1xf32>
    %289 = tpu.reciprocal %288 {approx = true} : vector<16x1xf32> -> vector<16x1xf32>
    %290 = vector.broadcast %289 : vector<16x1xf32> to vector<16x16xf32>
    %291 = arith.mulf %284, %290 : vector<16x16xf32>
    %cst_121 = arith.constant dense<0.000000e+00> : vector<16x4xf32>
    %292 = tpu.matmul %291, %266, %cst_121 {dimension_numbers = #tpu.dot_dimension_numbers<[1], [0], [0], [1], [0, 0, 1, 1], [], []>} : vector<16x16xf32>, vector<16x4xf32>, vector<16x4xf32> -> vector<16x4xf32>
    %c0_122 = arith.constant 0 : index
    %c0_123 = arith.constant 0 : index
    %293 = vector.load %arg14[%c0_122, %c0_123] : memref<16x32xf32, #tpu.memory_space<vmem>>, vector<16x4xf32>
    tpu.vector_store %arg14[%c0_122, %c0_123], %292 {strides = array<i32>} : memref<16x32xf32, #tpu.memory_space<vmem>>, vector<16x4xf32>,
    %c0_124 = arith.constant 0 : index
    %c0_125 = arith.constant 0 : index
    %294 = vector.load %arg14[%c0_124, %c0_125] : memref<16x32xf32, #tpu.memory_space<vmem>>, vector<16x4xf32>
    %295 = arith.addf %294, %265 : vector<16x4xf32>
    %c0_126 = arith.constant 0 : index
    %c0_127 = arith.constant 0 : index
    %296 = vector.load %arg13[%c0_126, %c0_127] : memref<16x4xf32, #tpu.memory_space<vmem>>, vector<16x4xf32>
    tpu.vector_store %arg13[%c0_126, %c0_127], %295 {strides = array<i32>} : memref<16x4xf32, #tpu.memory_space<vmem>>, vector<16x4xf32>,
    return
  }
}

</mosaic_0001>

<bundles_post_ra>
// kernel: tpu_custom_call.1
= control target key start
LH: loop header
LB: loop body
LE: loop exit
PB: predicated region body
PF: predicated region fallthrough
CT: control target
= control target key end

     0   :  { %vm59_vm0 = vcmask 64512   ;;  %v1380_v8 = vmov 3   ;;  %v1381_v9 = vmov 2   ;;  %vm112_vm1 = vcmask 261120   ;;  %s1386_s25 = smov 112   ;;  %s1387_s26 = smov 120   ;;  %s1863_s2 = inlined_call_operand.vmem [shape: f32[8,32], index: 2, kind: input, shape index: {}]   ;;  %s1864_s0 = inlined_call_operand.vmem [shape: f32[16,8], index: 0, kind: input, shape index: {}]   ;;  %s1865_s5 = inlined_call_operand.vmem [shape: f32[8,32], index: 5, kind: input, shape index: {}]   ;;  %s1866_s4 = inlined_call_operand.vmem [shape: f32[32,4], index: 4, kind: input, shape index: {}]   ;;  %s1867_s3 = inlined_call_operand.vmem [shape: f32[4,32], index: 3, kind: input, shape index: {}]   ;;  %s1868_s1 = inlined_call_operand.vmem [shape: f32[16,16], index: 1, kind: input, shape index: {}]   ;;  %s1869_s6 = inlined_call_operand.vmem [shape: f32[32,32], index: 6, kind: input, shape index: {}]   ;;  %s1870_s8 = inlined_call_operand.vmem [shape: f32[32,4], index: 8, kind: input, shape index: {}]   ;;  %s1871_s7 = inlined_call_operand.vmem [shape: f32[4,32], index: 7, kind: input, shape index: {}]   ;;  %s1872_s12 = inlined_call_operand.vmem [shape: f32[32,4], index: 12, kind: input, shape index: {}]   ;;  %s1873_s9 = inlined_call_operand.vmem [shape: f32[32,4], index: 9, kind: input, shape index: {}]   ;;  %s1874_s11 = inlined_call_operand.vmem [shape: f32[4,1], index: 11, kind: input, shape index: {}]   ;;  %s1875_s10 = inlined_call_operand.vmem [shape: f32[1,4], index: 10, kind: input, shape index: {}]   ;;  %s1876_s13 = inlined_call_operand.vmem [shape: f32[16,4], index: 13, kind: output, shape index: {}]  }
   0x1   :  { %v52_v0 = vld [vmem:[%s1863_s2] sm:$0xff]  ;;  %v57_v3 = vld [vmem:[%s1866_s4 + $0x18] sm:$0xff]  ;;  %v56_v4 = vld [vmem:[%s1866_s4 + $0x10] sm:$0xff]  ;;  %1253 = vset.pattern.permute.xlu0 %v1380_v8  ;;  %1255 = vset.pattern.permute.xlu1 %v1381_v9  ;;  %v1382_v13 = vmov 1   ;;  %v1383_v18 = vmov 0   ;;  %vm186_vm7 = vcmask 130048  }
   0x2   :  { %v50_v1 = vld [vmem:[%s1864_s0] sm:$0xff]  ;;  %104 = vmatpush.msra.mxu1 %v52_v0  ;;  %1238 = vmatpush.msra.mxu2 %v57_v3  ;;  %v55_v5 = vld [vmem:[%s1866_s4 + $0x8] sm:$0xff]  ;;  %v1384_v31 = vmov -1e+30   ;;  %s1388_s27 = smov 24   ;;  %s1389_s28 = smov 8  }
   0x3   :  { %v58_v2 = vld [vmem:[%s1865_s5] sm:$0xff]  ;;  %1192 = vmatmul.msk.f32.vlgmr.msra.gmra.mxu1 %vm59_vm0, %v50_v1  ;;  %v51_v6 = vld [vmem:[%s1864_s0 + $0x8] sm:$0xff]  ;;  %1258 = vset.pattern.permute.xlu2 %v1382_v13  ;;  %s1390_s29 = smov 16   ;;  %vm332_vm13 = vcmask 130112   ;;  %vm423_vm14 = vcmask 195712   ;;  %vm514_vm15 = vcmask 261312  }
   0x4   :  { %81 = vmatpush.msra.mxu0 %v58_v2  ;;  %1239 = vmatpush.msra.mxu2 %v56_v4  ;;  %v54_v7 = vld [vmem:[%s1866_s4] sm:$0xff]  ;;  %v1536_v33 = vld [vmem:[%s1868_s1 + $0x8] sm:$0xff] }
   0x5   :  { %1190 = vmatmul.msk.f32.vlgmr.msra.gmra.mxu0 %vm59_vm0, %v50_v1  ;;  %v53_v12 = vld [vmem:[%s1867_s3] sm:$0xf]  ;;  %vm47_vm6 = vcmp.gt.f32.partialorder %v1536_v33, 0.0 }
   0x6   :  { %131 = vmatpush.msrb.mxu0 %v57_v3  ;;  %1240 = vmatpush.msra.mxu2 %v55_v5  ;;  %v1523_v21 = vld [vmem:[%s1868_s1] sm:$0xff]  ;;  %v1546_v47 = vsel %vm47_vm6, 0.0, %v1384_v31  ;;  %s1385_s1 = smov 104  }
   0x7   :  { %vm46_vm2 = vcmp.gt.f32.partialorder %v1523_v21, 0.0 }
   0x8   :  { %132 = vmatpush.msrb.mxu0 %v56_v4  ;;  %1241 = vmatpush.msra.mxu2 %v54_v7  ;;  %v1531_v32 = vsel %vm46_vm2, 0.0, %v1384_v31 }
   0xa   :  { %133 = vmatpush.msrb.mxu0 %v55_v5 }
   0xb   :  { %1193 = vmatmul.msk.f32.gmra.mxu1 %vm59_vm0, %v51_v6 }
   0xc   :  { %134 = vmatpush.msrb.mxu0 %v54_v7 }
   0xd   :  { %1191 = vmatmul.msk.f32.gmra.mxu0 %vm59_vm0, %v51_v6 }
  0x80   :  { %v1490_v10 = vpop.f32.mrf.mxu1 }
  0x81   :  { %1194 = vmatmul.msk.f32.vlgmr.msrb.gmra.mxu0 %vm112_vm1, %v1490_v10 }
  0x82   :  { %v1509_v14 = vpop.f32.mrf.mxu0 }
  0x88   :  { %v1494_v11 = vpop.f32.mrf.mxu1 }
  0x89   :  { %1195 = vmatmul.msk.f32.vlgmr.msra.gmra.mxu2 %vm112_vm1, %v1494_v11  ;;  %1196 = vmatpush.xpose.msk.msra.mxu3 %vm112_vm1, %v1494_v11 }
  0x8a   :  { %v1511_v15 = vpop.f32.mrf.mxu0 }
  0x8d   :  { %1197 = vmatpush.xpose.msk.msra.mxu3 %vm112_vm1, %v1490_v10 }
  0x90   :  { %1198 = vmatmul.msk.f32.vlgmr.msra.gmra.mxu3 %vm112_vm1, %v53_v12 }
  0x91   :  { %233 = vmatpush.msrb.mxu3 %v1494_v11 }
  0x93   :  { %234 = vmatpush.msrb.mxu3 %v1490_v10 }
  0xfe   :  { %v136_v16 = vpop.f32.mrf.mxu0 }
  0xff   :  { %336 = vperm.xlu1 %1255, %v136_v16   ;;  %427 = vperm.xlu0 %1253, %v136_v16  }
 0x107   :  { %1254 = vset.pattern.permute.xlu0 %v1382_v13  ;;  %1256 = vset.pattern.permute.xlu1 %v1380_v8 }
 0x108   :  { %245 = vperm.xlu0 %1254, %v136_v16  }
 0x10c   :  { %v139_v17 = vpop.f32.mrf.mxu2 }
 0x10d   :  { %249 = vperm.xlu2 %1258, %v139_v17   ;;  %431 = vperm.xlu1 %1256, %v139_v17  }
 0x110   :  { %1276 = vset.pattern.permute.xlu0 %v1381_v9 }
 0x113   :  { %v1518_v20 = vpop.f32.mrf.mxu3 }
 0x114   :  { %v252_v22 = vperm.slane %v1518_v20, 1  ;;  %v343_v23 = vperm.slane %v1518_v20, 2  ;;  %v434_v24 = vperm.slane %v1518_v20, 3  ;;  %v175_v41 = vperm.slane %v1518_v20, 0 }
 0x115   :  { %1259 = vset.pattern.permute.xlu2 %v1381_v9  ;;  %1257 = vset.pattern.permute.xlu1 %v1383_v18 }
 0x116   :  { %340 = vperm.xlu2 %1259, %v139_v17   ;;  %167 = vperm.xlu1 %1257, %v136_v16  }
 0x11e   :  { %1260 = vset.pattern.permute.xlu2 %v1383_v18  ;;  %1279 = vset.pattern.permute.xlu1 %v1381_v9 }
 0x11f   :  { %172 = vperm.xlu2 %1260, %v139_v17  }
 0x127   :  { %1278 = vset.pattern.permute.xlu2 %v1380_v8 }
 0x167   :  { %v250_v19 = vpop.permute.xlu2 %249 }
 0x168   :  { %v254_v28 = vadd.f32 %v252_v22, %v250_v19 }
 0x16a   :  { %v258_v36 = vmul.f32 0.2, %v254_v28  ;;  %vm256_vm5 = vcmp.gt.f32.partialorder %v254_v28, 0.0 }
 0x16c   :  { %v260_v48 = vsel %vm256_vm5, %v254_v28, %v258_v36 }
 0x16d   :  { %v262_v52 = vadd.f32 %v260_v48, %v1546_v47 }
 0x16f   :  { %v266_v59 = vsel %vm186_vm7, %v262_v52, -inf }
 0x170   :  { %v341_v25 = vpop.permute.xlu2 %340 }
 0x171   :  { %v337_v26 = vpop.permute.xlu1 %336  ;;  %v428_v27 = vpop.permute.xlu0 %427  ;;  %v345_v49 = vadd.f32 %v343_v23, %v341_v25 }
 0x172   :  { %v344_v29 = vadd.f32 %v343_v23, %v337_v26  ;;  %v435_v30 = vadd.f32 %v434_v24, %v428_v27 }
 0x173   :  { %v349_v54 = vmul.f32 0.2, %v345_v49  ;;  %vm347_vm10 = vcmp.gt.f32.partialorder %v345_v49, 0.0 }
 0x174   :  { %vm346_vm3 = vcmp.gt.f32.partialorder %v344_v29, 0.0  ;;  %v348_v34 = vmul.f32 0.2, %v344_v29  ;;  %vm437_vm4 = vcmp.gt.f32.partialorder %v435_v30, 0.0  ;;  %v439_v35 = vmul.f32 0.2, %v435_v30 }
 0x175   :  { %v351_v63 = vsel %vm347_vm10, %v345_v49, %v349_v54 }
 0x176   :  { %v350_v37 = vsel %vm346_vm3, %v344_v29, %v348_v34  ;;  %v441_v38 = vsel %vm437_vm4, %v435_v30, %v439_v35  ;;  %v353_v3 = vadd.f32 %v351_v63, %v1546_v47 }
 0x177   :  { %v352_v39 = vadd.f32 %v350_v37, %v1531_v32  ;;  %v443_v40 = vadd.f32 %v441_v38, %v1531_v32 }
 0x178   :  { %v357_v9 = vsel %vm186_vm7, %v353_v3, -inf }
 0x179   :  { %v173_v42 = vpop.permute.xlu2 %172  ;;  %v354_v43 = vsel %vm186_vm7, %v352_v39, -inf  ;;  %v445_v44 = vsel %vm186_vm7, %v443_v40, -inf }
 0x17a   :  { %v177_v45 = vadd.f32 %v175_v41, %v173_v42  ;;  %355 = vmax.xlane.f32.xlu2 %v354_v43  ;;  %446 = vmax.xlane.f32.xlu0 %v445_v44  ;;  %v246_v46 = vpop.permute.xlu0 %245 }
 0x17b   :  { %v253_v50 = vadd.f32 %v252_v22, %v246_v46 }
 0x17c   :  { %v181_v53 = vmul.f32 0.2, %v177_v45  ;;  %vm179_vm9 = vcmp.gt.f32.partialorder %v177_v45, 0.0 }
 0x17d   :  { %vm255_vm8 = vcmp.gt.f32.partialorder %v253_v50, 0.0  ;;  %v257_v51 = vmul.f32 0.2, %v253_v50 }
 0x17e   :  { %v183_v62 = vsel %vm179_vm9, %v177_v45, %v181_v53 }
 0x17f   :  { %v432_v55 = vpop.permute.xlu1 %431  ;;  %v259_v56 = vsel %vm255_vm8, %v253_v50, %v257_v51  ;;  %v1554_v2 = vadd.f32 %v183_v62, %v1546_v47 }
 0x180   :  { %v436_v57 = vadd.f32 %v434_v24, %v432_v55  ;;  %v261_v58 = vadd.f32 %v259_v56, %v1531_v32 }
 0x181   :  { %v190_v7 = vsel %vm186_vm7, %v1554_v2, -inf }
 0x182   :  { %vm438_vm11 = vcmp.gt.f32.partialorder %v436_v57, 0.0  ;;  %v440_v60 = vmul.f32 0.2, %v436_v57  ;;  %267 = vmax.xlane.f32.xlu0 %v266_v59  ;;  %v263_v61 = vsel %vm186_vm7, %v261_v58, -inf }
 0x183   :  { %264 = vmax.xlane.f32.xlu1 %v263_v61 }
 0x184   :  { %v442_v0 = vsel %vm438_vm11, %v436_v57, %v440_v60  ;;  %v1261_v60 = vpack.i.bf16 %v1490_v10, %v1494_v11 }
 0x185   :  { %v444_v1 = vadd.f32 %v442_v0, %v1546_v47 }
 0x187   :  { %v448_v4 = vsel %vm186_vm7, %v444_v1, -inf }
 0x188   :  { %449 = vmax.xlane.f32.xlu2 %v448_v4  ;;  %v168_v5 = vpop.permute.xlu1 %167 }
 0x189   :  { %v176_v6 = vadd.f32 %v175_v41, %v168_v5 }
 0x18a   :  { %191 = vmax.xlane.f32.xlu0 %v190_v7 }
 0x18b   :  { %vm178_vm12 = vcmp.gt.f32.partialorder %v176_v6, 0.0  ;;  %v180_v12 = vmul.f32 0.2, %v176_v6  ;;  %358 = vmax.xlane.f32.xlu1 %v357_v9 }
 0x18d   :  { %v182_v16 = vsel %vm178_vm12, %v176_v6, %v180_v12 }
 0x18e   :  { %v184_v17 = vadd.f32 %v182_v16, %v1531_v32 }
 0x190   :  { %v187_v19 = vsel %vm186_vm7, %v184_v17, -inf }
 0x191   :  { %188 = vmax.xlane.f32.xlu2 %v187_v19 }
 0x1ed   :  { %v356_v20 = vpop.xlane.xlu2 %355  ;;  %v447_v22 = vpop.xlane.xlu0 %446 }
 0x1ee   :  { %v360_v23 = vsub.f32 %v352_v39, %v356_v20  ;;  %v451_v24 = vsub.f32 %v443_v40, %v447_v22 }
 0x1f0   :  { %v362_v25 = vmul.f32 1.442695, %v360_v23  ;;  %v453_v26 = vmul.f32 1.442695, %v451_v24 }
 0x1f2   :  { %1300 = vpow2.f32 %v362_v25 }
 0x1f3   :  { %1302 = vpow2.f32 %v453_v26 }
 0x1f5   :  { %v268_v27 = vpop.xlane.xlu0 %267 }
 0x1f6   :  { %v270_v28 = vsub.f32 %v262_v52, %v268_v27  ;;  %v265_v29 = vpop.xlane.xlu1 %264 }
 0x1f7   :  { %v269_v30 = vsub.f32 %v261_v58, %v265_v29 }
 0x1f8   :  { %v1301_v31 = vpop.eup %1300  ;;  %v273_v34 = vmul.f32 1.442695, %v270_v28 }
 0x1f9   :  { %v1303_v35 = vpop.eup %1302  ;;  %v271_v36 = vmul.f32 1.442695, %v269_v30  ;;  %v1565_v37 = vsel %vm46_vm2, %v1301_v31, 0.0 }
 0x1fa   :  { %1304 = vpow2.f32 %v273_v34  ;;  %v368_v38 = vsel %vm186_vm7, %v1565_v37, 0.0  ;;  %v1571_v39 = vsel %vm46_vm2, %v1303_v35, 0.0 }
 0x1fb   :  { %1306 = vpow2.f32 %v271_v36  ;;  %v450_v40 = vpop.xlane.xlu2 %449  ;;  %369 = vadd.xlane.f32.xlu0 %v368_v38  ;;  %v459_v41 = vsel %vm186_vm7, %v1571_v39, 0.0 }
 0x1fc   :  { %v452_v42 = vsub.f32 %v444_v1, %v450_v40  ;;  %460 = vadd.xlane.f32.xlu1 %v459_v41 }
 0x1fd   :  { %v192_v63 = vpop.xlane.xlu0 %191 }
 0x1fe   :  { %v455_v43 = vmul.f32 1.442695, %v452_v42  ;;  %v359_v44 = vpop.xlane.xlu1 %358  ;;  %v194_v1 = vsub.f32 %v1554_v2, %v192_v63 }
 0x1ff   :  { %v361_v45 = vsub.f32 %v353_v3, %v359_v44 }
 0x200   :  { %v1305_v46 = vpop.eup %1304  ;;  %1308 = vpow2.f32 %v455_v43  ;;  %v197_v3 = vmul.f32 1.442695, %v194_v1 }
 0x201   :  { %v1307_v48 = vpop.eup %1306  ;;  %v364_v49 = vmul.f32 1.442695, %v361_v45  ;;  %v1577_v50 = vsel %vm47_vm6, %v1305_v46, 0.0 }
 0x202   :  { %v280_v51 = vsel %vm186_vm7, %v1577_v50, 0.0  ;;  %v1583_v52 = vsel %vm46_vm2, %v1307_v48, 0.0 }
 0x203   :  { %1310 = vpow2.f32 %v364_v49  ;;  %281 = vadd.xlane.f32.xlu0 %v280_v51  ;;  %v277_v53 = vsel %vm186_vm7, %v1583_v52, 0.0 }
 0x204   :  { %278 = vadd.xlane.f32.xlu2 %v277_v53  ;;  %v189_v61 = vpop.xlane.xlu2 %188 }
 0x205   :  { %v193_v62 = vsub.f32 %v184_v17, %v189_v61 }
 0x206   :  { %v1309_v54 = vpop.eup %1308 }
 0x207   :  { %v458_v55 = vsel %vm47_vm6, %v1309_v54, 0.0  ;;  %v195_v0 = vmul.f32 1.442695, %v193_v62 }
 0x208   :  { %v462_v56 = vsel %vm186_vm7, %v458_v55, 0.0 }
 0x209   :  { %v1311_v57 = vpop.eup %1310  ;;  %463 = vadd.xlane.f32.xlu1 %v462_v56  ;;  %1312 = vpow2.f32 %v195_v0 }
 0x20a   :  { %v1592_v58 = vsel %vm47_vm6, %v1311_v57, 0.0  ;;  %1314 = vpow2.f32 %v197_v3 }
 0x20b   :  { %v371_v59 = vsel %vm186_vm7, %v1592_v58, 0.0 }
 0x20c   :  { %372 = vadd.xlane.f32.xlu0 %v371_v59 }
 0x20f   :  { %v1313_v4 = vpop.eup %1312 }
 0x210   :  { %v1604_v10 = vsel %vm46_vm2, %v1313_v4, 0.0  ;;  %v1315_v5 = vpop.eup %1314  ;;  %v534_v4 = vld [vmem:[%s1869_s6 + $0x18] sm:$0xff] }
 0x211   :  { %v201_v11 = vsel %vm186_vm7, %v1604_v10, 0.0  ;;  %v1610_v6 = vsel %vm47_vm6, %v1315_v5, 0.0  ;;  %558 = vmatpush.msra.mxu3 %v534_v4  ;;  %v531_v5 = vld [vmem:[%s1869_s6] sm:$0xff] }
 0x212   :  { %v204_v2 = vsel %vm186_vm7, %v1610_v6, 0.0 }
 0x21c   :  { %1262 = vrot.lane.b32.xlu2 %v1261_v60, %s1385_s1 }
 0x220   :  { %1272 = vrot.lane.b32.xlu0 %v1261_v60, %s1386_s25 }
 0x222   :  { %1267 = vrot.lane.b32.xlu1 %v1261_v60, %s1387_s26 }
 0x245   :  { %202 = vadd.xlane.f32.xlu2 %v201_v11  ;;  %v532_v11 = vld [vmem:[%s1869_s6 + $0x8] sm:$0xff] }
 0x24c   :  { %205 = vadd.xlane.f32.xlu1 %v204_v2 }
 0x26e   :  { %v370_v12 = vpop.xlane.xlu0 %369 }
 0x26f   :  { %v461_v7 = vpop.xlane.xlu1 %460  ;;  %v374_v28 = vmax.f32 %v370_v12, 1e-30  ;;  %v538_v12 = vld [vmem:[%s1870_s8 + $0x10] sm:$0xff] }
 0x270   :  { %v465_v9 = vmax.f32 %v461_v7, 1e-30 }
 0x272   :  { %1316 = vrcp.f32 %v465_v9  ;;  %v539_v9 = vld [vmem:[%s1870_s8 + $0x18] sm:$0xff] }
 0x276   :  { %v282_v23 = vpop.xlane.xlu0 %281 }
 0x277   :  { %v279_v16 = vpop.xlane.xlu2 %278  ;;  %v284_v38 = vmax.f32 %v282_v23, 1e-30 }
 0x278   :  { %v1317_v22 = vpop.eup %1316  ;;  %v283_v30 = vmax.f32 %v279_v16, 1e-30  ;;  %v537_v16 = vld [vmem:[%s1870_s8 + $0x8] sm:$0xff] }
 0x279   :  { %v469_v26 = vmul.f32 %v1317_v22, %v1571_v39 }
 0x27c   :  { %v464_v17 = vpop.xlane.xlu1 %463 }
 0x27d   :  { %v466_v19 = vmax.f32 %v464_v17, 1e-30 }
 0x27f   :  { %v1263_v20 = vpop.permute.xlu2 %1262  ;;  %1318 = vrcp.f32 %v466_v19  ;;  %v373_v29 = vpop.xlane.xlu0 %372 }
 0x280   :  { %v1264_v24 = vunpack.i.l.bf16 %v1263_v20  ;;  %v1265_v25 = vunpack.i.h.bf16 %v1263_v20  ;;  %1320 = vrcp.f32 %v374_v28  ;;  %v375_v34 = vmax.f32 %v373_v29, 1e-30 }
 0x281   :  { %1322 = vrcp.f32 %v283_v30 }
 0x282   :  { %497 = vmatpush.msrb.mxu2 %v1264_v24  ;;  %1324 = vrcp.f32 %v375_v34 }
 0x283   :  { %1326 = vrcp.f32 %v284_v38  ;;  %v535_v38 = vld [vmem:[%s1871_s7] sm:$0xf] }
 0x284   :  { %498 = vmatpush.msrb.mxu2 %v1265_v25 }
 0x285   :  { %1205 = vmatmul.msk.f32.vlgmr.msrb.gmra.mxu2 %vm186_vm7, %v469_v26  ;;  %v1319_v27 = vpop.eup %1318 }
 0x286   :  { %v470_v31 = vmul.f32 %v1319_v27, %v458_v55  ;;  %v1321_v36 = vpop.eup %1320 }
 0x287   :  { %v1323_v42 = vpop.eup %1322  ;;  %v378_v44 = vmul.f32 %v1321_v36, %v1565_v37 }
 0x288   :  { %v287_v46 = vmul.f32 %v1323_v42, %v1583_v52  ;;  %v1325_v48 = vpop.eup %1324 }
 0x289   :  { %v1327_v49 = vpop.eup %1326  ;;  %v379_v51 = vmul.f32 %v1325_v48, %v1592_v58 }
 0x28a   :  { %v288_v53 = vmul.f32 %v1327_v49, %v1577_v50 }
 0x28d   :  { %1206 = vmatmul.msk.f32.gmra.mxu2 %vm186_vm7, %v470_v31 }
 0x292   :  { %v1273_v35 = vpop.permute.xlu0 %1272 }
 0x293   :  { %v1274_v40 = vunpack.i.l.bf16 %v1273_v35  ;;  %v1275_v43 = vunpack.i.h.bf16 %v1273_v35 }
 0x294   :  { %v1268_v41 = vpop.permute.xlu1 %1267 }
 0x295   :  { %v1269_v39 = vunpack.i.l.bf16 %v1268_v41  ;;  %406 = vmatpush.msrb.mxu1 %v1274_v40  ;;  %v1270_v45 = vunpack.i.h.bf16 %v1268_v41 }
 0x297   :  { %315 = vmatpush.msra.mxu0 %v1269_v39  ;;  %407 = vmatpush.msrb.mxu1 %v1275_v43 }
 0x298   :  { %1203 = vmatmul.msk.f32.vlgmr.msrb.gmra.mxu1 %vm186_vm7, %v378_v44 }
 0x299   :  { %316 = vmatpush.msra.mxu0 %v1270_v45 }
 0x29a   :  { %1201 = vmatmul.msk.f32.vlgmr.msra.gmra.mxu0 %vm186_vm7, %v287_v46 }
 0x29b   :  { %587 = vmatpush.msrb.mxu0 %v539_v9 }
 0x29d   :  { %588 = vmatpush.msrb.mxu0 %v538_v12 }
 0x29f   :  { %589 = vmatpush.msrb.mxu0 %v537_v16 }
 0x2a0   :  { %1204 = vmatmul.msk.f32.gmra.mxu1 %vm186_vm7, %v379_v51 }
 0x2a2   :  { %1202 = vmatmul.msk.f32.gmra.mxu0 %vm186_vm7, %v288_v53 }
 0x2b8   :  { %v203_v37 = vpop.xlane.xlu2 %202 }
 0x2b9   :  { %v207_v54 = vmax.f32 %v203_v37, 1e-30 }
 0x2bb   :  { %1328 = vrcp.f32 %v207_v54 }
 0x2bf   :  { %v206_v55 = vpop.xlane.xlu1 %205 }
 0x2c0   :  { %v208_v52 = vmax.f32 %v206_v55, 1e-30 }
 0x2c1   :  { %v1329_v56 = vpop.eup %1328 }
 0x2c2   :  { %1330 = vrcp.f32 %v208_v52  ;;  %v211_v57 = vmul.f32 %v1329_v56, %v1604_v10  ;;  %v533_v10 = vld [vmem:[%s1869_s6 + $0x10] sm:$0xff] }
 0x2c3   :  { %559 = vmatpush.msra.mxu3 %v533_v10 }
 0x2c4   :  { %1199 = vmatmul.msk.f32.vlgmr.msrb.gmra.mxu3 %vm186_vm7, %v211_v57 }
 0x2c5   :  { %560 = vmatpush.msra.mxu3 %v532_v11 }
 0x2c7   :  { %561 = vmatpush.msra.mxu3 %v531_v5 }
 0x2c8   :  { %v1331_v59 = vpop.eup %1330 }
 0x2c9   :  { %v212_v58 = vmul.f32 %v1331_v59, %v1610_v6 }
 0x2cc   :  { %1200 = vmatmul.msk.f32.gmra.mxu3 %vm186_vm7, %v212_v58 }
 0x308   :  { %v500_v60 = vpop.f32.mrf.mxu2 }
 0x310   :  { %v503_v50 = vpop.f32.mrf.mxu2 }
 0x311   :  { %510 = vrot.lane.b32.xlu1 %v503_v50, %s1388_s27 }
 0x315   :  { %v409_v61 = vpop.f32.mrf.mxu1 }
 0x317   :  { %v318_v62 = vpop.f32.mrf.mxu0 }
 0x318   :  { %326 = vrot.lane.b32.xlu0 %v318_v62, %s1389_s28 }
 0x31d   :  { %v412_v63 = vpop.f32.mrf.mxu1 }
 0x31e   :  { %419 = vrot.lane.b32.xlu2 %v412_v63, %s1390_s29 }
 0x31f   :  { %v321_v0 = vpop.f32.mrf.mxu0 }
 0x320   :  { %417 = vrot.lane.b32.xlu0 %v409_v61, %s1390_s29 }
 0x328   :  { %508 = vrot.lane.b32.xlu0 %v500_v60, %s1388_s27 }
 0x330   :  { %328 = vrot.lane.b32.xlu0 %v321_v0, %s1389_s28 }
 0x347   :  { %v236_v1 = vpop.f32.mrf.mxu3 }
 0x348   :  { %242 = vst.msk [vmem:[#allocation2] sm:$0xff] %vm59_vm0, %v236_v1 }
 0x34f   :  { %v239_v3 = vpop.f32.mrf.mxu3 }
 0x350   :  { %243 = vst.msk [vmem:[#allocation2 + $0x8] sm:$0xff] %vm59_vm0, %v239_v3 }
 0x378   :  { %v420_v20 = vpop.permute.xlu2 %419 }
 0x383   :  { %v511_v23 = vpop.permute.xlu1 %510 }
 0x38a   :  { %v327_v6 = vpop.permute.xlu0 %326 }
 0x38b   :  { %333 = vst.msk [vmem:[#allocation2] sm:$0xff] %vm332_vm13, %v327_v6 }
 0x392   :  { %v418_v2 = vpop.permute.xlu0 %417 }
 0x393   :  { %424 = vst.msk [vmem:[#allocation2] sm:$0xff] %vm423_vm14, %v418_v2 }
 0x39a   :  { %v509_v7 = vpop.permute.xlu0 %508 }
 0x39b   :  { %515 = vst.msk [vmem:[#allocation2] sm:$0xff] %vm514_vm15, %v509_v7 }
 0x3a2   :  { %v329_v17 = vpop.permute.xlu0 %328  ;;  %v517_v19 = vld [vmem:[#allocation2] sm:$0xff] }
 0x3a3   :  { %334 = vst.msk [vmem:[#allocation2 + $0x8] sm:$0xff] %vm332_vm13, %v329_v17  ;;  %v519_v22 = vadd.f32 %v517_v19, %v1509_v14 }
 0x3a4   :  { %425 = vst.msk [vmem:[#allocation2 + $0x8] sm:$0xff] %vm423_vm14, %v420_v20 }
 0x3a5   :  { %516 = vst.msk [vmem:[#allocation2 + $0x8] sm:$0xff] %vm514_vm15, %v511_v23  ;;  %v523_v24 = vmul.f32 1.442695, %v519_v22  ;;  %vm521_vm3 = vcmp.gt.f32.partialorder %v519_v22, 0.0 }
 0x3a7   :  { %1332 = vpow2.f32 %v523_v24 }
 0x3ac   :  { %v518_v25 = vld [vmem:[#allocation2 + $0x8] sm:$0xff] }
 0x3ad   :  { %v1333_v26 = vpop.eup %1332  ;;  %v520_v27 = vadd.f32 %v518_v25, %v1511_v15  ;;  %v536_v15 = vld [vmem:[%s1870_s8] sm:$0xff] }
 0x3ae   :  { %v1207_v28 = vadd.f32 -1.0, %v1333_v26  ;;  %590 = vmatpush.msrb.mxu0 %v536_v15 }
 0x3af   :  { %v525_v29 = vmul.f32 1.442695, %v520_v27  ;;  %vm522_vm4 = vcmp.gt.f32.partialorder %v520_v27, 0.0 }
 0x3b0   :  { %v1666_v30 = vsel %vm521_vm3, %v519_v22, %v1207_v28 }
 0x3b1   :  { %1209 = vmatmul.msk.f32.vlgmr.msra.gmra.mxu3 %vm112_vm1, %v1666_v30  ;;  %1334 = vpow2.f32 %v525_v29 }
 0x3b7   :  { %v1335_v14 = vpop.eup %1334 }
 0x3b8   :  { %v1208_v31 = vadd.f32 -1.0, %v1335_v14 }
 0x3ba   :  { %v1670_v34 = vsel %vm522_vm4, %v520_v27, %v1208_v31 }
 0x3bb   :  { %1210 = vmatmul.msk.f32.gmra.mxu3 %vm112_vm1, %v1670_v34 }
 0x434   :  { %v1677_v35 = vpop.f32.mrf.mxu3 }
 0x435   :  { %1211 = vmatmul.msk.f32.vlgmr.msrb.gmra.mxu0 %vm112_vm1, %v1677_v35 }
 0x43e   :  { %v1681_v36 = vpop.f32.mrf.mxu3 }
 0x43f   :  { %1212 = vmatmul.msk.f32.gmra.mxu0 %vm112_vm1, %v1681_v36  ;;  %1213 = vmatpush.xpose.msk.msra.mxu1 %vm112_vm1, %v1681_v36 }
 0x440   :  { %688 = vmatpush.msra.mxu2 %v1681_v36 }
 0x442   :  { %689 = vmatpush.msra.mxu2 %v1677_v35 }
 0x443   :  { %1214 = vmatpush.xpose.msk.msra.mxu1 %vm112_vm1, %v1677_v35 }
 0x446   :  { %1215 = vmatmul.msk.f32.vlgmr.msra.gmra.mxu1 %vm112_vm1, %v535_v38 }
 0x4b2   :  { %v592_v40 = vpop.f32.mrf.mxu0 }
 0x4b3   :  { %790 = vperm.xlu0 %1276, %v592_v40   ;;  %880 = vperm.xlu2 %1278, %v592_v40  }
 0x4bb   :  { %1277 = vset.pattern.permute.xlu0 %v1382_v13  ;;  %1281 = vset.pattern.permute.xlu2 %v1382_v13 }
 0x4bc   :  { %700 = vperm.xlu0 %1277, %v592_v40   ;;  %v595_v41 = vpop.f32.mrf.mxu0 }
 0x4bd   :  { %704 = vperm.xlu2 %1281, %v595_v41   ;;  %794 = vperm.xlu1 %1279, %v595_v41  }
 0x4c3   :  { %v618_v42 = vpop.f32.mrf.mxu1 }
 0x4c4   :  { %1282 = vset.pattern.permute.xlu0 %v1380_v8  ;;  %v887_v39 = vperm.slane %v618_v42, 3  ;;  %v797_v48 = vperm.slane %v618_v42, 2  ;;  %v707_v54 = vperm.slane %v618_v42, 1  ;;  %v631_v63 = vperm.slane %v618_v42, 0 }
 0x4c5   :  { %884 = vperm.xlu0 %1282, %v595_v41   ;;  %1283 = vset.pattern.permute.xlu2 %v1383_v18 }
 0x4c6   :  { %1280 = vset.pattern.permute.xlu1 %v1383_v18  ;;  %628 = vperm.xlu2 %1283, %v595_v41  }
 0x4c7   :  { %623 = vperm.xlu1 %1280, %v592_v40  }
 0x4cd   :  { %1299 = vset.pattern.permute.xlu0 %v1383_v18 }
 0x50d   :  { %v881_v43 = vpop.permute.xlu2 %880 }
 0x50e   :  { %v888_v44 = vadd.f32 %v887_v39, %v881_v43 }
 0x510   :  { %vm890_vm5 = vcmp.gt.f32.partialorder %v888_v44, 0.0  ;;  %v892_v13 = vmul.f32 0.2, %v888_v44 }
 0x512   :  { %v894_v45 = vsel %vm890_vm5, %v888_v44, %v892_v13 }
 0x513   :  { %v1702_v46 = vadd.f32 %v894_v45, %v1531_v32 }
 0x515   :  { %v898_v8 = vsel %vm186_vm7, %v1702_v46, -inf }
 0x516   :  { %899 = vmax.xlane.f32.xlu0 %v898_v8 }
 0x517   :  { %v705_v18 = vpop.permute.xlu2 %704 }
 0x518   :  { %v709_v57 = vadd.f32 %v707_v54, %v705_v18 }
 0x51a   :  { %v713_v62 = vmul.f32 0.2, %v709_v57  ;;  %vm711_vm11 = vcmp.gt.f32.partialorder %v709_v57, 0.0 }
 0x51c   :  { %v715_v7 = vsel %vm711_vm11, %v709_v57, %v713_v62 }
 0x51d   :  { %v717_v19 = vadd.f32 %v715_v7, %v1546_v47 }
 0x51f   :  { %v721_v25 = vsel %vm186_vm7, %v717_v19, -inf }
 0x520   :  { %v629_v1 = vpop.permute.xlu2 %628 }
 0x521   :  { %v633_v5 = vadd.f32 %v631_v63, %v629_v1 }
 0x523   :  { %v637_v20 = vmul.f32 0.2, %v633_v5  ;;  %vm635_vm3 = vcmp.gt.f32.partialorder %v633_v5, 0.0 }
 0x525   :  { %v791_v49 = vpop.permute.xlu0 %790  ;;  %v639_v29 = vsel %vm635_vm3, %v633_v5, %v637_v20 }
 0x526   :  { %v798_v51 = vadd.f32 %v797_v48, %v791_v49  ;;  %v641_v31 = vadd.f32 %v639_v29, %v1546_v47 }
 0x528   :  { %vm800_vm8 = vcmp.gt.f32.partialorder %v798_v51, 0.0  ;;  %v802_v53 = vmul.f32 0.2, %v798_v51  ;;  %v645_v15 = vsel %vm186_vm7, %v641_v31, -inf }
 0x52a   :  { %v804_v37 = vsel %vm800_vm8, %v798_v51, %v802_v53 }
 0x52b   :  { %v806_v55 = vadd.f32 %v804_v37, %v1531_v32 }
 0x52d   :  { %v808_v52 = vsel %vm186_vm7, %v806_v55, -inf }
 0x52e   :  { %v701_v56 = vpop.permute.xlu0 %700  ;;  %809 = vmax.xlane.f32.xlu1 %v808_v52 }
 0x52f   :  { %v708_v59 = vadd.f32 %v707_v54, %v701_v56  ;;  %v795_v58 = vpop.permute.xlu1 %794 }
 0x530   :  { %v799_v60 = vadd.f32 %v797_v48, %v795_v58 }
 0x531   :  { %vm710_vm9 = vcmp.gt.f32.partialorder %v708_v59, 0.0  ;;  %v712_v50 = vmul.f32 0.2, %v708_v59 }
 0x532   :  { %vm801_vm10 = vcmp.gt.f32.partialorder %v799_v60, 0.0  ;;  %v803_v61 = vmul.f32 0.2, %v799_v60 }
 0x533   :  { %v714_v0 = vsel %vm710_vm9, %v708_v59, %v712_v50 }
 0x534   :  { %v716_v3 = vadd.f32 %v714_v0, %v1531_v32  ;;  %v805_v4 = vsel %vm801_vm10, %v799_v60, %v803_v61 }
 0x535   :  { %v807_v10 = vadd.f32 %v805_v4, %v1546_v47 }
 0x536   :  { %v718_v11 = vsel %vm186_vm7, %v716_v3, -inf }
 0x537   :  { %v885_v6 = vpop.permute.xlu0 %884  ;;  %719 = vmax.xlane.f32.xlu2 %v718_v11  ;;  %v811_v2 = vsel %vm186_vm7, %v807_v10, -inf }
 0x538   :  { %v889_v9 = vadd.f32 %v887_v39, %v885_v6  ;;  %812 = vmax.xlane.f32.xlu1 %v811_v2  ;;  %v1289_v6 = vpack.i.bf16 %v1677_v35, %v1681_v36 }
 0x539   :  { %v624_v12 = vpop.permute.xlu1 %623 }
 0x53a   :  { %vm891_vm12 = vcmp.gt.f32.partialorder %v889_v9, 0.0  ;;  %v893_v16 = vmul.f32 0.2, %v889_v9  ;;  %v632_v17 = vadd.f32 %v631_v63, %v624_v12 }
 0x53c   :  { %vm634_vm4 = vcmp.gt.f32.partialorder %v632_v17, 0.0  ;;  %v636_v22 = vmul.f32 0.2, %v632_v17  ;;  %v895_v23 = vsel %vm891_vm12, %v889_v9, %v893_v16 }
 0x53d   :  { %v897_v24 = vadd.f32 %v895_v23, %v1546_v47 }
 0x53e   :  { %v638_v26 = vsel %vm634_vm4, %v632_v17, %v636_v22 }
 0x53f   :  { %722 = vmax.xlane.f32.xlu2 %v721_v25  ;;  %v901_v27 = vsel %vm186_vm7, %v897_v24, -inf  ;;  %v1717_v28 = vadd.f32 %v638_v26, %v1531_v32 }
 0x540   :  { %902 = vmax.xlane.f32.xlu0 %v901_v27 }
 0x541   :  { %v642_v14 = vsel %vm186_vm7, %v1717_v28, -inf }
 0x542   :  { %643 = vmax.xlane.f32.xlu1 %v642_v14 }
 0x547   :  { %646 = vmax.xlane.f32.xlu2 %v645_v15 }
 0x589   :  { %v900_v38 = vpop.xlane.xlu0 %899 }
 0x58a   :  { %v904_v40 = vsub.f32 %v1702_v46, %v900_v38 }
 0x58c   :  { %v906_v41 = vmul.f32 1.442695, %v904_v40 }
 0x58e   :  { %1336 = vpow2.f32 %v906_v41 }
 0x594   :  { %v1337_v42 = vpop.eup %1336 }
 0x595   :  { %v1726_v39 = vsel %vm46_vm2, %v1337_v42, 0.0 }
 0x596   :  { %v912_v43 = vsel %vm186_vm7, %v1726_v39, 0.0 }
 0x597   :  { %913 = vadd.xlane.f32.xlu2 %v912_v43 }
 0x5a1   :  { %v810_v44 = vpop.xlane.xlu1 %809 }
 0x5a2   :  { %v814_v13 = vsub.f32 %v806_v55, %v810_v44 }
 0x5a4   :  { %v816_v45 = vmul.f32 1.442695, %v814_v13 }
 0x5a6   :  { %1338 = vpow2.f32 %v816_v45 }
 0x5aa   :  { %v720_v8 = vpop.xlane.xlu2 %719 }
 0x5ab   :  { %v724_v48 = vsub.f32 %v716_v3, %v720_v8  ;;  %v813_v49 = vpop.xlane.xlu1 %812 }
 0x5ac   :  { %v1339_v51 = vpop.eup %1338  ;;  %v815_v46 = vsub.f32 %v807_v10, %v813_v49 }
 0x5ad   :  { %v726_v53 = vmul.f32 1.442695, %v724_v48  ;;  %v1732_v18 = vsel %vm46_vm2, %v1339_v51, 0.0 }
 0x5ae   :  { %v818_v37 = vmul.f32 1.442695, %v815_v46  ;;  %v822_v54 = vsel %vm186_vm7, %v1732_v18, 0.0 }
 0x5af   :  { %1340 = vpow2.f32 %v726_v53  ;;  %823 = vadd.xlane.f32.xlu0 %v822_v54 }
 0x5b0   :  { %1342 = vpow2.f32 %v818_v37 }
 0x5b2   :  { %v723_v55 = vpop.xlane.xlu2 %722 }
 0x5b3   :  { %v725_v52 = vsub.f32 %v717_v19, %v723_v55  ;;  %v903_v56 = vpop.xlane.xlu0 %902 }
 0x5b4   :  { %v905_v57 = vsub.f32 %v897_v24, %v903_v56 }
 0x5b5   :  { %v1341_v59 = vpop.eup %1340  ;;  %v728_v58 = vmul.f32 1.442695, %v725_v52  ;;  %v644_v9 = vpop.xlane.xlu1 %643 }
 0x5b6   :  { %v1343_v60 = vpop.eup %1342  ;;  %v730_v50 = vsel %vm46_vm2, %v1341_v59, 0.0  ;;  %v908_v61 = vmul.f32 1.442695, %v905_v57  ;;  %v648_v12 = vsub.f32 %v1717_v28, %v644_v9 }
 0x5b7   :  { %1344 = vpow2.f32 %v728_v58  ;;  %v732_v62 = vsel %vm186_vm7, %v730_v50, 0.0  ;;  %v1741_v63 = vsel %vm47_vm6, %v1343_v60, 0.0 }
 0x5b8   :  { %733 = vadd.xlane.f32.xlu1 %v732_v62  ;;  %v825_v0 = vsel %vm186_vm7, %v1741_v63, 0.0  ;;  %1346 = vpow2.f32 %v908_v61  ;;  %v650_v17 = vmul.f32 1.442695, %v648_v12 }
 0x5b9   :  { %826 = vadd.xlane.f32.xlu0 %v825_v0 }
 0x5ba   :  { %v647_v2 = vpop.xlane.xlu2 %646 }
 0x5bb   :  { %v649_v7 = vsub.f32 %v641_v31, %v647_v2 }
 0x5bd   :  { %v1345_v1 = vpop.eup %1344  ;;  %v652_v16 = vmul.f32 1.442695, %v649_v7 }
 0x5be   :  { %v1747_v3 = vsel %vm47_vm6, %v1345_v1, 0.0  ;;  %v1347_v10 = vpop.eup %1346 }
 0x5bf   :  { %v735_v4 = vsel %vm186_vm7, %v1747_v3, 0.0  ;;  %v1753_v11 = vsel %vm47_vm6, %v1347_v10, 0.0  ;;  %1348 = vpow2.f32 %v652_v16  ;;  %v992_v16 = vld [vmem:[%s1872_s12 + $0x18] sm:$0xff] }
 0x5c0   :  { %736 = vadd.xlane.f32.xlu2 %v735_v4  ;;  %v915_v5 = vsel %vm186_vm7, %v1753_v11, 0.0  ;;  %1350 = vpow2.f32 %v650_v17  ;;  %v986_v17 = vld [vmem:[%s1873_s9 + $0x18] sm:$0xff]  ;;  %1011 = vmatpush.msrb.mxu2 %v992_v16 }
 0x5c5   :  { %v1349_v19 = vpop.eup %1348 }
 0x5c6   :  { %v1765_v20 = vsel %vm47_vm6, %v1349_v19, 0.0  ;;  %v1351_v35 = vpop.eup %1350  ;;  %v991_v19 = vld [vmem:[%s1872_s12 + $0x10] sm:$0xff] }
 0x5c7   :  { %v659_v36 = vsel %vm186_vm7, %v1765_v20, 0.0  ;;  %v654_v22 = vsel %vm46_vm2, %v1351_v35, 0.0  ;;  %1012 = vmatpush.msrb.mxu2 %v991_v19  ;;  %v990_v35 = vld [vmem:[%s1872_s12 + $0x8] sm:$0xff] }
 0x5c8   :  { %916 = vadd.xlane.f32.xlu2 %v915_v5  ;;  %v656_v23 = vsel %vm186_vm7, %v654_v22, 0.0 }
 0x5c9   :  { %1013 = vmatpush.msrb.mxu2 %v990_v35 }
 0x5cd   :  { %1290 = vrot.lane.b32.xlu0 %v1289_v6, %s1387_s26 }
 0x5d1   :  { %1285 = vrot.lane.b32.xlu1 %v1289_v6, %s1386_s25 }
 0x5e0   :  { %1295 = vrot.lane.b32.xlu2 %v1289_v6, %s1385_s1 }
 0x5f7   :  { %660 = vadd.xlane.f32.xlu0 %v659_v36  ;;  %v984_v36 = vld [vmem:[%s1873_s9 + $0x8] sm:$0xff] }
 0x5fb   :  { %657 = vadd.xlane.f32.xlu1 %v656_v23  ;;  %v983_v23 = vld [vmem:[%s1873_s9] sm:$0xff] }
 0x60a   :  { %v914_v24 = vpop.xlane.xlu2 %913 }
 0x60b   :  { %v918_v14 = vmax.f32 %v914_v24, 1e-30 }
 0x622   :  { %v824_v25 = vpop.xlane.xlu0 %823 }
 0x623   :  { %v828_v31 = vmax.f32 %v824_v25, 1e-30 }
 0x62b   :  { %v734_v26 = vpop.xlane.xlu1 %733 }
 0x62c   :  { %v738_v28 = vmax.f32 %v734_v26, 1e-30  ;;  %v827_v29 = vpop.xlane.xlu0 %826 }
 0x62d   :  { %v829_v43 = vmax.f32 %v827_v29, 1e-30 }
 0x62e   :  { %1352 = vrcp.f32 %v738_v28 }
 0x62f   :  { %1354 = vrcp.f32 %v918_v14 }
 0x630   :  { %1356 = vrcp.f32 %v828_v31 }
 0x633   :  { %v737_v27 = vpop.xlane.xlu2 %736 }
 0x634   :  { %v739_v38 = vmax.f32 %v737_v27, 1e-30  ;;  %v1353_v41 = vpop.eup %1352 }
 0x635   :  { %v1355_v45 = vpop.eup %1354  ;;  %v742_v8 = vmul.f32 %v1353_v41, %v730_v50 }
 0x636   :  { %1358 = vrcp.f32 %v739_v38  ;;  %v1357_v51 = vpop.eup %1356  ;;  %v922_v55 = vmul.f32 %v1355_v45, %v1726_v39  ;;  %v988_v45 = vld [vmem:[%s1874_s11] sm:$0xf] }
 0x637   :  { %1360 = vrcp.f32 %v829_v43  ;;  %v832_v52 = vmul.f32 %v1357_v51, %v1732_v18 }
 0x63b   :  { %v917_v15 = vpop.xlane.xlu2 %916 }
 0x63c   :  { %v919_v44 = vmax.f32 %v917_v15, 1e-30  ;;  %v1359_v56 = vpop.eup %1358 }
 0x63d   :  { %v1361_v57 = vpop.eup %1360  ;;  %v743_v59 = vmul.f32 %v1359_v56, %v1747_v3 }
 0x63e   :  { %1362 = vrcp.f32 %v919_v44  ;;  %v833_v60 = vmul.f32 %v1361_v57, %v1741_v63 }
 0x63f   :  { %v1291_v40 = vpop.permute.xlu0 %1290 }
 0x640   :  { %v1292_v42 = vunpack.i.l.bf16 %v1291_v40  ;;  %v1293_v13 = vunpack.i.h.bf16 %v1291_v40 }
 0x642   :  { %770 = vmatpush.msrb.mxu1 %v1292_v42 }
 0x643   :  { %v1286_v48 = vpop.permute.xlu1 %1285  ;;  %v1296_v49 = vpop.permute.xlu2 %1295 }
 0x644   :  { %v1287_v46 = vunpack.i.l.bf16 %v1286_v48  ;;  %v1297_v53 = vunpack.i.l.bf16 %v1296_v49  ;;  %771 = vmatpush.msrb.mxu1 %v1293_v13  ;;  %v1288_v37 = vunpack.i.h.bf16 %v1286_v48  ;;  %v1298_v54 = vunpack.i.h.bf16 %v1296_v49  ;;  %v1363_v58 = vpop.eup %1362  ;;  %v987_v48 = vld [vmem:[%s1875_s10] sm:$0x1] }
 0x645   :  { %1218 = vmatmul.msk.f32.vlgmr.msrb.gmra.mxu1 %vm186_vm7, %v742_v8  ;;  %v923_v50 = vmul.f32 %v1363_v58, %v1753_v11 }
 0x646   :  { %860 = vmatpush.msrb.mxu3 %v1287_v46  ;;  %950 = vmatpush.msra.mxu0 %v1297_v53 }
 0x647   :  { %1034 = vmatpush.msra.mxu1 %v986_v17 }
 0x648   :  { %861 = vmatpush.msrb.mxu3 %v1288_v37  ;;  %951 = vmatpush.msra.mxu0 %v1298_v54 }
 0x649   :  { %1220 = vmatmul.msk.f32.vlgmr.msrb.gmra.mxu3 %vm186_vm7, %v832_v52  ;;  %1222 = vmatmul.msk.f32.vlgmr.msra.gmra.mxu0 %vm186_vm7, %v922_v55 }
 0x64d   :  { %1219 = vmatmul.msk.f32.gmra.mxu1 %vm186_vm7, %v743_v59 }
 0x651   :  { %1221 = vmatmul.msk.f32.gmra.mxu3 %vm186_vm7, %v833_v60  ;;  %1223 = vmatmul.msk.f32.gmra.mxu0 %vm186_vm7, %v923_v50 }
 0x66a   :  { %v661_v61 = vpop.xlane.xlu0 %660 }
 0x66b   :  { %v663_v62 = vmax.f32 %v661_v61, 1e-30 }
 0x66e   :  { %v658_v39 = vpop.xlane.xlu1 %657 }
 0x66f   :  { %v662_v18 = vmax.f32 %v658_v39, 1e-30 }
 0x671   :  { %1364 = vrcp.f32 %v662_v18 }
 0x672   :  { %1366 = vrcp.f32 %v663_v62 }
 0x677   :  { %v1365_v0 = vpop.eup %1364 }
 0x678   :  { %v666_v1 = vmul.f32 %v1365_v0, %v654_v22  ;;  %v1367_v3 = vpop.eup %1366  ;;  %v989_v22 = vld [vmem:[%s1872_s12] sm:$0xff] }
 0x679   :  { %v667_v4 = vmul.f32 %v1367_v3, %v1765_v20  ;;  %v985_v20 = vld [vmem:[%s1873_s9 + $0x10] sm:$0xff]  ;;  %1014 = vmatpush.msrb.mxu2 %v989_v22 }
 0x67a   :  { %1216 = vmatmul.msk.f32.vlgmr.msra.gmra.mxu2 %vm186_vm7, %v666_v1  ;;  %1035 = vmatpush.msra.mxu1 %v985_v20 }
 0x67c   :  { %1036 = vmatpush.msra.mxu1 %v984_v36 }
 0x67e   :  { %1037 = vmatpush.msra.mxu1 %v983_v23 }
 0x682   :  { %1217 = vmatmul.msk.f32.gmra.mxu2 %vm186_vm7, %v667_v4 }
 0x6c2   :  { %v773_v63 = vpop.f32.mrf.mxu1 }
 0x6c3   :  { %781 = vrot.lane.b32.xlu2 %v773_v63, %s1389_s28 }
 0x6c6   :  { %v953_v10 = vpop.f32.mrf.mxu0 }
 0x6ca   :  { %v776_v11 = vpop.f32.mrf.mxu1 }
 0x6cb   :  { %783 = vrot.lane.b32.xlu1 %v776_v11, %s1389_s28  ;;  %961 = vrot.lane.b32.xlu2 %v953_v10, %s1388_s27 }
 0x6cc   :  { %v863_v6 = vpop.f32.mrf.mxu3 }
 0x6ce   :  { %v956_v5 = vpop.f32.mrf.mxu0 }
 0x6cf   :  { %963 = vrot.lane.b32.xlu0 %v956_v5, %s1388_s27 }
 0x6d3   :  { %871 = vrot.lane.b32.xlu2 %v863_v6, %s1390_s29 }
 0x6d4   :  { %v866_v2 = vpop.f32.mrf.mxu3 }
 0x6db   :  { %873 = vrot.lane.b32.xlu2 %v866_v2, %s1390_s29 }
 0x6fd   :  { %v691_v7 = vpop.f32.mrf.mxu2 }
 0x6fe   :  { %697 = vst.msk [vmem:[#allocation2] sm:$0xff] %vm59_vm0, %v691_v7 }
 0x705   :  { %v694_v9 = vpop.f32.mrf.mxu2 }
 0x706   :  { %698 = vst.msk [vmem:[#allocation2 + $0x8] sm:$0xff] %vm59_vm0, %v694_v9 }
 0x71d   :  { %v782_v12 = vpop.permute.xlu2 %781 }
 0x71e   :  { %787 = vst.msk [vmem:[#allocation2] sm:$0xff] %vm332_vm13, %v782_v12 }
 0x725   :  { %v962_v24 = vpop.permute.xlu2 %961 }
 0x72d   :  { %v872_v25 = vpop.permute.xlu2 %871 }
 0x72e   :  { %877 = vst.msk [vmem:[#allocation2] sm:$0xff] %vm423_vm14, %v872_v25 }
 0x72f   :  { %967 = vst.msk [vmem:[#allocation2] sm:$0xff] %vm514_vm15, %v962_v24 }
 0x735   :  { %v874_v14 = vpop.permute.xlu2 %873 }
 0x736   :  { %v969_v26 = vld [vmem:[#allocation2] sm:$0xff] }
 0x737   :  { %v971_v27 = vadd.f32 %v969_v26, %v1666_v30 }
 0x739   :  { %v975_v28 = vmul.f32 1.442695, %v971_v27  ;;  %vm973_vm0 = vcmp.gt.f32.partialorder %v971_v27, 0.0 }
 0x73b   :  { %1368 = vpow2.f32 %v975_v28 }
 0x73d   :  { %v784_v29 = vpop.permute.xlu1 %783 }
 0x73e   :  { %788 = vst.msk [vmem:[#allocation2 + $0x8] sm:$0xff] %vm332_vm13, %v784_v29 }
 0x73f   :  { %878 = vst.msk [vmem:[#allocation2 + $0x8] sm:$0xff] %vm423_vm14, %v874_v14  ;;  %vm1052_vm14 = vcmask 1043456  }
 0x740   :  { %1230 = vmatpush.msk.msra.mxu3 %vm1052_vm14, %v988_v45 }
 0x741   :  { %v1369_v31 = vpop.eup %1368  ;;  %v964_v15 = vpop.permute.xlu0 %963 }
 0x742   :  { %968 = vst.msk [vmem:[#allocation2 + $0x8] sm:$0xff] %vm514_vm15, %v964_v15  ;;  %v1224_v38 = vadd.f32 -1.0, %v1369_v31  ;;  %vm1045_vm15 = vcmask 31744  }
 0x744   :  { %v981_v40 = vsel %vm973_vm0, %v971_v27, %v1224_v38 }
 0x745   :  { %1226 = vmatmul.msk.f32.vlgmr.msrb.gmra.mxu2 %vm112_vm1, %v981_v40  ;;  %1228 = vmatmul.msk.f32.vlgmr.msra.gmra.mxu1 %vm112_vm1, %v981_v40 }
 0x749   :  { %v970_v30 = vld [vmem:[#allocation2 + $0x8] sm:$0xff] }
 0x74a   :  { %v972_v41 = vadd.f32 %v970_v30, %v1670_v34 }
 0x74c   :  { %v977_v42 = vmul.f32 1.442695, %v972_v41  ;;  %vm974_vm13 = vcmp.gt.f32.partialorder %v972_v41, 0.0 }
 0x74e   :  { %1370 = vpow2.f32 %v977_v42 }
 0x754   :  { %v1371_v43 = vpop.eup %1370 }
 0x755   :  { %v1225_v44 = vadd.f32 -1.0, %v1371_v43 }
 0x757   :  { %v982_v13 = vsel %vm974_vm13, %v972_v41, %v1225_v44 }
 0x758   :  { %1227 = vmatmul.msk.f32.gmra.mxu2 %vm112_vm1, %v982_v13  ;;  %1229 = vmatmul.msk.f32.gmra.mxu1 %vm112_vm1, %v982_v13 }
 0x7c2   :  { %v1039_v8 = vpop.f32.mrf.mxu1 }
 0x7c3   :  { %1231 = vmatmul.msk.f32.vlgmr.msra.gmra.mxu3 %vm1045_vm15, %v1039_v8 }
 0x7c8   :  { %v1016_v19 = vpop.f32.mrf.mxu2 }
 0x7d5   :  { %v1042_v34 = vpop.f32.mrf.mxu1 }
 0x7d6   :  { %1232 = vmatmul.msk.f32.gmra.mxu3 %vm1045_vm15, %v1042_v34  ;;  %1233 = vmatpush.xpose.msk.msrb.mxu0 %vm1045_vm15, %v1042_v34 }
 0x7d7   :  { %1169 = vmatpush.msra.mxu2 %v1042_v34 }
 0x7d9   :  { %1170 = vmatpush.msra.mxu2 %v1039_v8 }
 0x7da   :  { %1234 = vmatpush.xpose.msk.msrb.mxu0 %vm1045_vm15, %v1039_v8 }
 0x7db   :  { %v1019_v33 = vpop.f32.mrf.mxu2 }
 0x7dd   :  { %1235 = vmatmul.msk.f32.vlgmr.msrb.gmra.mxu0 %vm1045_vm15, %v987_v48 }
 0x846   :  { %v1073_v49 = vpop.f32.mrf.mxu3 }
 0x847   :  { %1104 = vperm.xlu2 %1283, %v1073_v49  }
 0x859   :  { %v1076_v51 = vpop.f32.mrf.mxu3 }
 0x85a   :  { %1109 = vperm.xlu2 %1283, %v1076_v51   ;;  %v1099_v46 = vpop.f32.mrf.mxu0 }
 0x85b   :  { %v1112_v53 = vperm.slane %v1099_v46, 0 }
 0x8a1   :  { %v1105_v37 = vpop.permute.xlu2 %1104 }
 0x8a2   :  { %v1113_v54 = vadd.f32 %v1112_v53, %v1105_v37 }
 0x8a4   :  { %vm1115_vm1 = vcmp.gt.f32.partialorder %v1113_v54, 0.0  ;;  %v1117_v55 = vmul.f32 0.2, %v1113_v54 }
 0x8a6   :  { %v1119_v52 = vsel %vm1115_vm1, %v1113_v54, %v1117_v55 }
 0x8a7   :  { %v1121_v56 = vadd.f32 %v1119_v52, %v1531_v32 }
 0x8a9   :  { %v1123_v57 = vsel %vm186_vm7, %v1121_v56, -inf }
 0x8aa   :  { %1124 = vmax.xlane.f32.xlu0 %v1123_v57 }
 0x8b4   :  { %v1110_v59 = vpop.permute.xlu2 %1109 }
 0x8b5   :  { %v1114_v58 = vadd.f32 %v1112_v53, %v1110_v59 }
 0x8b7   :  { %vm1116_vm5 = vcmp.gt.f32.partialorder %v1114_v58, 0.0  ;;  %v1118_v60 = vmul.f32 0.2, %v1114_v58 }
 0x8b9   :  { %v1120_v50 = vsel %vm1116_vm5, %v1114_v58, %v1118_v60 }
 0x8ba   :  { %v1122_v39 = vadd.f32 %v1120_v50, %v1546_v47 }
 0x8bc   :  { %v1126_v18 = vsel %vm186_vm7, %v1122_v39, -inf }
 0x8bd   :  { %1127 = vmax.xlane.f32.xlu2 %v1126_v18 }
 0x91d   :  { %v1125_v61 = vpop.xlane.xlu0 %1124 }
 0x91e   :  { %v1129_v62 = vsub.f32 %v1121_v56, %v1125_v61 }
 0x920   :  { %v1131_v0 = vmul.f32 1.442695, %v1129_v62 }
 0x922   :  { %1372 = vpow2.f32 %v1131_v0 }
 0x928   :  { %v1373_v1 = vpop.eup %1372 }
 0x929   :  { %v1135_v32 = vsel %vm46_vm2, %v1373_v1, 0.0 }
 0x92a   :  { %v1137_v3 = vsel %vm186_vm7, %v1135_v32, 0.0 }
 0x92b   :  { %1138 = vadd.xlane.f32.xlu1 %v1137_v3 }
 0x930   :  { %v1128_v4 = vpop.xlane.xlu2 %1127 }
 0x931   :  { %v1130_v63 = vsub.f32 %v1122_v39, %v1128_v4 }
 0x933   :  { %v1133_v10 = vmul.f32 1.442695, %v1130_v63 }
 0x935   :  { %1374 = vpow2.f32 %v1133_v10 }
 0x93b   :  { %v1375_v11 = vpop.eup %1374 }
 0x93c   :  { %v1136_v47 = vsel %vm47_vm6, %v1375_v11, 0.0 }
 0x93d   :  { %v1140_v5 = vsel %vm186_vm7, %v1136_v47, 0.0 }
 0x93e   :  { %1141 = vadd.xlane.f32.xlu0 %v1140_v5 }
 0x99e   :  { %v1139_v6 = vpop.xlane.xlu1 %1138 }
 0x99f   :  { %v1143_v2 = vmax.f32 %v1139_v6, 1e-30 }
 0x9a1   :  { %1376 = vrcp.f32 %v1143_v2 }
 0x9a7   :  { %v1377_v7 = vpop.eup %1376 }
 0x9a8   :  { %v1147_v21 = vmul.f32 %v1377_v7, %v1135_v32 }
 0x9aa   :  { %1236 = vmatmul.msk.f32.vlgmr.msra.gmra.mxu2 %vm186_vm7, %v1147_v21 }
 0x9b1   :  { %v1142_v9 = vpop.xlane.xlu0 %1141 }
 0x9b2   :  { %v1144_v12 = vmax.f32 %v1142_v9, 1e-30 }
 0x9b4   :  { %1378 = vrcp.f32 %v1144_v12 }
 0x9ba   :  { %v1379_v16 = vpop.eup %1378 }
 0x9bb   :  { %v1148_v17 = vmul.f32 %v1379_v16, %v1136_v47 }
 0x9bd   :  { %1237 = vmatmul.msk.f32.gmra.mxu2 %vm186_vm7, %v1148_v17 }
 0xa2d   :  { %v1172_v20 = vpop.f32.mrf.mxu2 }
 0xa2e   :  { %1178 = vst.msk [vmem:[#allocation2] sm:$0xff] %vm1045_vm15, %v1172_v20 }
 0xa35   :  { %v1180_v35 = vld [vmem:[#allocation2] sm:$0xff] }
 0xa36   :  { %v1182_v36 = vadd.f32 %v1180_v35, %v1016_v19 }
 0xa38   :  { %1184 = vst.msk [vmem:[%s1876_s13] sm:$0xff] %vm1045_vm15, %v1182_v36 }
 0xa40   :  { %v1175_v22 = vpop.f32.mrf.mxu2 }
 0xa41   :  { %1179 = vst.msk [vmem:[#allocation2 + $0x8] sm:$0xff] %vm1045_vm15, %v1175_v22 }
 0xa48   :  { %v1181_v23 = vld [vmem:[#allocation2 + $0x8] sm:$0xff] }
 0xa49   :  { %v1183_v24 = vadd.f32 %v1181_v23, %v1019_v33 }
 0xa4b   :  { %1185 = vst.msk [vmem:[%s1876_s13 + $0x8] sm:$0xff] %vm1045_vm15, %v1183_v24 }

</bundles_post_ra>
